<compile_context>
chip_gen: v7x
topology: tpu7x:2x2x1
jax: 0.10.0
libtpu: 0.0.40
codegen_flags: <defaults>
</compile_context>

<pallas_src>
import functools

import jax
import jax.numpy as jnp
from jax.experimental import pallas as pl
from jax.experimental.pallas import tpu as pltpu


_VMEM_LIMIT = 48 * 1024 * 1024  # explicit scoped-VMEM headroom (fits v5e/v6e/v7x)


def _round_up(x, m):
    return (x + m - 1) // m * m


def _pad2(a, rows, cols):
    return jnp.pad(a, ((0, rows - a.shape[0]), (0, cols - a.shape[1])))


# ----------------------------------------------------------------------------
# Pallas kernels
# ----------------------------------------------------------------------------

def _layer_norm_padded(y, gamma, beta, true_dim, eps=1e-5):
    """LayerNorm over the first `true_dim` columns of a zero-padded slab.

    Padded columns of y are exactly zero, so sums over all columns equal sums
    over the true columns; dividing by `true_dim` gives the correct stats.
    gamma/beta are zero in the padded columns, so padded outputs stay zero.
    """
    inv = 1.0 / true_dim
    mu = jnp.sum(y, axis=-1, keepdims=True) * inv
    var = jnp.sum(y * y, axis=-1, keepdims=True) * inv - mu * mu
    return (y - mu) * jax.lax.rsqrt(var + eps) * gamma + beta


def _encoder_kernel(x_ref, p_ref, e_ref, w1_ref, b1_ref, w2_ref, b2_ref, o_ref,
                    *, hid):
    # Fused: Linear(idim,100) -> Tanh -> Linear(128, adim_p) where the hidden
    # slab is zero-padded 100->128 and the pitch/energy Conv1d(k=1) embeds ride
    # along as two extra rows of the second matmul (hidden columns hid, hid+1).
    h = jnp.tanh(
        jnp.dot(x_ref[...], w1_ref[...], preferred_element_type=jnp.float32)
        + b1_ref[...])
    lane = jax.lax.broadcasted_iota(jnp.int32, h.shape, 1)
    h = jnp.where(lane == hid, p_ref[...], h)        # pitch slot
    h = jnp.where(lane == hid + 1, e_ref[...], h)    # energy slot
    enc = (jnp.dot(h.astype(jnp.bfloat16), w2_ref[...],
                   preferred_element_type=jnp.float32) + b2_ref[...])
    o_ref[...] = enc.astype(o_ref.dtype)


def _decoder_kernel(x_ref, halo_ref, wdec_ref, bdec_ref, gdec_ref, bedec_ref,
                    wfeat_ref, bfeat_ref, wout_ref, bout_ref, gout_ref,
                    beout_ref, wgm_ref, wgt_ref, bg_ref,
                    before_ref, enriched_ref, g_ref,
                    *, adim, odim, adim_p, tl):
    # Per-(batch, time-tile) fused decoder path:
    #   dec-in integrate (Linear+LN) -> feat_out -> dec-out integrate (Linear+LN)
    #   -> g_proj Conv1d(odim+adim -> adim, k=5, padding=2).
    # The tile carries a 2-row halo on each side so the k=5 conv is exact at
    # tile boundaries.  Extended-slab row layout (tl + 16 rows):
    #   [pad x6, prev-2, prev-1, centre 0..tl-1, next+0, next+1, pad x6]
    ext = tl + 16

    # ---- decoder-in integration (utterance-embedding part folded into bdec) --
    y_c = jnp.dot(x_ref[0], wdec_ref[...], preferred_element_type=jnp.float32)
    y_h = jnp.dot(halo_ref[0, 0], wdec_ref[...],
                  preferred_element_type=jnp.float32)
    y = jnp.concatenate([y_h[:8], y_c, y_h[8:]], axis=0) + bdec_ref[0]
    dec_in = _layer_norm_padded(y, gdec_ref[...], bedec_ref[...], adim)

    # Zero out-of-sequence halo rows so the conv sees torch's zero padding at
    # the sequence boundaries (cheap boundary mask, VPU only).
    r = jax.lax.broadcasted_iota(jnp.int32, (ext, 1), 0)
    j = pl.program_id(1)
    oob = ((j == 0) & (r < 8)) | ((j == pl.num_programs(1) - 1) & (r >= 8 + tl))
    dec_in = jnp.where(oob, 0.0, dec_in)
    dec_in_b = dec_in.astype(jnp.bfloat16)

    # ---- feat_out: Linear(adim, odim) ---------------------------------------
    before = (jnp.dot(dec_in_b, wfeat_ref[...],
                      preferred_element_type=jnp.float32) + bfeat_ref[...])
    before_ref[0] = before[8:8 + tl]

    # ---- decoder-out integration --------------------------------------------
    y2 = (jnp.dot(before.astype(jnp.bfloat16), wout_ref[...],
                  preferred_element_type=jnp.float32) + bout_ref[0])
    enriched = _layer_norm_padded(y2, gout_ref[...], beout_ref[...], odim)
    enriched_ref[0] = enriched[8:8 + tl]
    enriched = jnp.where(oob, 0.0, enriched)

    # ---- g_proj conv: two wide matmuls produce all five taps at once; each
    #      tap is then read at its shifted row window of the extended slab
    #      (output row t <-> ext row 8 + t; tap k reads ext rows 6+k .. 6+k+tl).
    tap = (jnp.dot(enriched.astype(jnp.bfloat16), wgm_ref[...],
                   preferred_element_type=jnp.float32)
           + jnp.dot(dec_in_b, wgt_ref[...],
                     preferred_element_type=jnp.float32))     # (ext, 5*adim_p)
    acc = jnp.zeros((tl, adim_p), jnp.float32) + bg_ref[...]
    for k in range(5):
        acc = acc + tap[6 + k:6 + k + tl, k * adim_p:(k + 1) * adim_p]
    g_ref[0] = acc


# ----------------------------------------------------------------------------
# Wrappers (pallas_call plumbing)
# ----------------------------------------------------------------------------

def run_encoder(x, pitch, energy, p, adim_p):
    """Fused embed + pitch/energy embed over flattened, tiled (B*T) tokens."""
    B, T, idim = x.shape
    bf = jnp.bfloat16
    hid = p["embed_w1"].shape[1]                 # 100
    hid_p = _round_up(hid + 2, 128)              # pitch/energy slots + pad -> 128
    adim = p["embed_w2"].shape[1]
    M = B * T
    tm = min(512, _round_up(M, 8))               # big tiles, cdiv-style grid
    m_pad = _round_up(M, tm)

    xm = x.reshape(M, idim)
    pm = pitch.reshape(M, 1)
    em = energy.reshape(M, 1)
    if m_pad > M:
        xm = jnp.pad(xm, ((0, m_pad - M), (0, 0)))
        pm = jnp.pad(pm, ((0, m_pad - M), (0, 0)))
        em = jnp.pad(em, ((0, m_pad - M), (0, 0)))

    w1p = _pad2(p["embed_w1"], idim, hid_p).astype(bf)
    b1p = _pad2(p["embed_b1"], 1, hid_p)
    # second matmul: rows [0,hid) = embed_w2, row hid = pitch conv weight,
    # row hid+1 = energy conv weight; k=1 conv biases folded into b2.
    w2aug = jnp.zeros((hid_p, adim_p), jnp.float32)
    w2aug = w2aug.at[:hid, :adim].set(p["embed_w2"])
    w2aug = w2aug.at[hid, :adim].set(p["pitch_embed_w"][0])
    w2aug = w2aug.at[hid + 1, :adim].set(p["energy_embed_w"][0])
    w2aug = w2aug.astype(bf)
    b2aug = _pad2(p["embed_b2"] + p["pitch_embed_b"] + p["energy_embed_b"],
                  1, adim_p)

    grid = (m_pad // tm,)
    out = pl.pallas_call(
        functools.partial(_encoder_kernel, hid=hid),
        out_shape=jax.ShapeDtypeStruct((m_pad, adim_p), bf),
        grid=grid,
        in_specs=[
            pl.BlockSpec((tm, idim), lambda i: (i, 0)),
            pl.BlockSpec((tm, 1), lambda i: (i, 0)),
            pl.BlockSpec((tm, 1), lambda i: (i, 0)),
            pl.BlockSpec((idim, hid_p), lambda i: (0, 0)),
            pl.BlockSpec((1, hid_p), lambda i: (0, 0)),
            pl.BlockSpec((hid_p, adim_p), lambda i: (0, 0)),
            pl.BlockSpec((1, adim_p), lambda i: (0, 0)),
        ],
        out_specs=pl.BlockSpec((tm, adim_p), lambda i: (i, 0)),
        compiler_params=pltpu.CompilerParams(
            dimension_semantics=("parallel",),
            vmem_limit_bytes=_VMEM_LIMIT),
    )(xm.astype(bf), pm, em, w1p, b1p, w2aug, b2aug)
    return out[:M].reshape(B, T, adim_p)


def run_decoder(expanded, dec_in_bias, dec_out_bias, p, adim, odim,
                adim_p, odim_p, tl):
    """Fused dec-in integrate -> feat_out -> dec-out integrate -> g_proj,
    tiled over (batch, time) with a 2-row halo for the k=5 conv."""
    B, L, A = expanded.shape                      # A == adim_p
    assert L % tl == 0 and tl % 8 == 0
    nL = L // tl
    bf = jnp.bfloat16

    # halo side input: 16 rows per tile: [0 x6, prev-2, prev-1, next+0, next+1, 0 x6]
    expt = expanded.reshape(B, nL, tl, A)
    z2 = jnp.zeros((B, 1, 2, A), expanded.dtype)
    prev2 = jnp.concatenate([z2, expt[:, :-1, tl - 2:, :]], axis=1)
    next2 = jnp.concatenate([expt[:, 1:, :2, :], z2], axis=1)
    z6 = jnp.zeros((B, nL, 6, A), expanded.dtype)
    halo = jnp.concatenate([z6, prev2, next2, z6], axis=2)     # (B, nL, 16, A)

    # zero-padded (lane-dense) weights, cast to bf16 for the MXU
    wdec = _pad2(p["dec_in_proj_w"][:adim], adim_p, adim_p).astype(bf)
    gdec = _pad2(p["dec_in_proj_g"], 1, adim_p)
    bedec = _pad2(p["dec_in_proj_beta"], 1, adim_p)
    wfeat = _pad2(p["feat_out_w"], adim_p, odim_p).astype(bf)
    bfeat = _pad2(p["feat_out_b"], 1, odim_p)
    wout = _pad2(p["dec_out_proj_w"][:odim], odim_p, odim_p).astype(bf)
    gout = _pad2(p["dec_out_proj_g"], 1, odim_p)
    beout = _pad2(p["dec_out_proj_beta"], 1, odim_p)
    # wide conv weights: column block k = tap k (kernel offset k-2)
    wg = p["g_proj_w"]                                          # (5, odim+adim, adim)
    wgm = jnp.pad(wg[:, :odim, :],
                  ((0, 0), (0, odim_p - odim), (0, adim_p - adim)))
    wgm = jnp.transpose(wgm, (1, 0, 2)).reshape(odim_p, 5 * adim_p).astype(bf)
    wgt = jnp.pad(wg[:, odim:, :],
                  ((0, 0), (0, adim_p - adim), (0, adim_p - adim)))
    wgt = jnp.transpose(wgt, (1, 0, 2)).reshape(adim_p, 5 * adim_p).astype(bf)
    bg = _pad2(p["g_proj_b"], 1, adim_p)
    dbias = _pad2(dec_in_bias, B, adim_p)[:, None, :]           # (B, 1, AP)
    obias = _pad2(dec_out_bias, B, odim_p)[:, None, :]          # (B, 1, OP)

    kernel = functools.partial(_decoder_kernel, adim=adim, odim=odim,
                               adim_p=adim_p, tl=tl)
    out_shapes = (
        jax.ShapeDtypeStruct((B, L, odim_p), jnp.float32),
        jax.ShapeDtypeStruct((B, L, odim_p), jnp.float32),
        jax.ShapeDtypeStruct((B, L, adim_p), jnp.float32),
    )
    before, enriched, g = pl.pallas_call(
        kernel,
        out_shape=out_shapes,
        grid=(B, nL),
        in_specs=[
            pl.BlockSpec((1, tl, A), lambda b, j: (b, j, 0)),         # expanded
            pl.BlockSpec((1, 1, 16, A), lambda b, j: (b, j, 0, 0)),   # halo
            pl.BlockSpec((adim_p, adim_p), lambda b, j: (0, 0)),      # wdec
            pl.BlockSpec((1, 1, adim_p), lambda b, j: (b, 0, 0)),     # dec-in bias
            pl.BlockSpec((1, adim_p), lambda b, j: (0, 0)),           # LN gamma
            pl.BlockSpec((1, adim_p), lambda b, j: (0, 0)),           # LN beta
            pl.BlockSpec((adim_p, odim_p), lambda b, j: (0, 0)),      # feat_out w
            pl.BlockSpec((1, odim_p), lambda b, j: (0, 0)),           # feat_out b
            pl.BlockSpec((odim_p, odim_p), lambda b, j: (0, 0)),      # wout
            pl.BlockSpec((1, 1, odim_p), lambda b, j: (b, 0, 0)),     # dec-out bias
            pl.BlockSpec((1, odim_p), lambda b, j: (0, 0)),           # LN gamma
            pl.BlockSpec((1, odim_p), lambda b, j: (0, 0)),           # LN beta
            pl.BlockSpec((odim_p, 5 * adim_p), lambda b, j: (0, 0)),  # g_proj (mel)
            pl.BlockSpec((adim_p, 5 * adim_p), lambda b, j: (0, 0)),  # g_proj (txt)
            pl.BlockSpec((1, adim_p), lambda b, j: (0, 0)),           # g_proj bias
        ],
        out_specs=[
            pl.BlockSpec((1, tl, odim_p), lambda b, j: (b, j, 0)),
            pl.BlockSpec((1, tl, odim_p), lambda b, j: (b, j, 0)),
            pl.BlockSpec((1, tl, adim_p), lambda b, j: (b, j, 0)),
        ],
        compiler_params=pltpu.CompilerParams(
            dimension_semantics=("parallel", "parallel"),
            vmem_limit_bytes=_VMEM_LIMIT),
    )(expanded, halo, wdec, dbias, gdec, bedec, wfeat, bfeat, wout, obias,
      gout, beout, wgm, wgt, bg)
    return before[..., :odim], enriched[..., :odim], g[..., :adim]


# ----------------------------------------------------------------------------
# Parameter construction (deterministic, synthetic)
# ----------------------------------------------------------------------------

def init_params(key, idim, adim, odim, uemb):
    ks = iter(jax.random.split(key, 40))

    def rnd(shape, scale=0.1):
        return scale * jax.random.normal(next(ks), shape, jnp.float32)

    p = {}
    # encoder input embedding: Linear(idim,100) -> Tanh -> Linear(100, adim)
    p["embed_w1"], p["embed_b1"] = rnd((idim, 100)), rnd((1, 100))
    p["embed_w2"], p["embed_b2"] = rnd((100, adim)), rnd((1, adim))
    # pitch/energy embed: Conv1d(1, adim, 1) -> weight stored as (1, adim)
    p["pitch_embed_w"], p["pitch_embed_b"] = rnd((1, adim)), rnd((1, adim))
    p["energy_embed_w"], p["energy_embed_b"] = rnd((1, adim)), rnd((1, adim))
    # decoder-in / decoder-out integration projections (Linear + LayerNorm)
    for name, din, dout in [("dec_in_proj", adim + uemb, adim),
                            ("dec_out_proj", odim + uemb, odim)]:
        p[f"{name}_w"], p[f"{name}_b"] = rnd((din, dout)), rnd((1, dout))
        p[f"{name}_g"] = 1.0 + rnd((1, dout))
        p[f"{name}_beta"] = rnd((1, dout))
    # feat_out: Linear(adim, odim)
    p["feat_out_w"], p["feat_out_b"] = rnd((adim, odim)), rnd((1, odim))
    # g_proj: Conv1d(odim+adim, adim, 5, padding=2) -> (5, Cin, Cout)
    p["g_proj_w"], p["g_proj_b"] = rnd((5, odim + adim, adim)), rnd((1, adim))
    return p


# ----------------------------------------------------------------------------
# PortaSpeech core forward (training path, gold durations/pitch/energy)
# ----------------------------------------------------------------------------

def length_regulate(x, durations, total_len):
    # Plain-JAX glue (data-dependent repeat has no static Pallas index_map).
    # Positions past sum(durations) are zero-padded (matches torch pad=0).
    def per_batch(xb, db):
        rep = jnp.repeat(xb, db, axis=0, total_repeat_length=total_len)
        valid = jnp.arange(total_len) < jnp.sum(db)
        return jnp.where(valid[:, None], rep, 0.0)
    return jax.vmap(per_batch)(x, durations)


@functools.partial(jax.jit, static_argnames=("lmax", "dec_tile"))
def portaspeech_forward(params, text, utt_emb, gold_durations, gold_pitch,
                        gold_energy, lmax, dec_tile=32):
    p = params
    bf = jnp.bfloat16
    adim = p["embed_w2"].shape[1]
    odim = p["feat_out_w"].shape[1]
    adim_p = _round_up(adim, 128)
    odim_p = _round_up(odim, 128)

    # --- encoder path (fused embed + gold pitch/energy Conv1d(k=1) embeds) ---
    # TODO(synk): Conformer encoder blocks not provided; identity after embed.
    encoded = run_encoder(text, gold_pitch, gold_energy, p, adim_p)  # bf16

    # TODO(synk): Duration/Pitch/Energy predictor modules are not defined in
    # the provided source; the speaker-conditioned variance-adaptor inputs
    # that only feed them are omitted rather than computed as dead work.

    # --- length regulation with gold durations ------------------------------
    expanded = length_regulate(encoded, gold_durations, lmax)

    # --- per-utterance constants hoisted out of the fused decoder kernel ----
    # torch.nn.functional.normalize (L2 over last dim, eps=1e-12)
    utt_n = utt_emb / jnp.maximum(
        jnp.linalg.norm(utt_emb, axis=-1, keepdims=True), 1e-12)
    dec_in_bias = (jnp.dot(utt_n.astype(bf), p["dec_in_proj_w"][adim:].astype(bf),
                           preferred_element_type=jnp.float32)
                   + p["dec_in_proj_b"])
    dec_out_bias = (jnp.dot(utt_n.astype(bf), p["dec_out_proj_w"][odim:].astype(bf),
                            preferred_element_type=jnp.float32)
                    + p["dec_out_proj_b"])

    # --- fused, time-tiled decoder path --------------------------------------
    # TODO(synk): Conformer decoder blocks not provided; identity inside.
    # TODO(synk): Glow post_flow and FastSpeech2Loss are not defined in the
    # provided source; glow loss / postnet spectrogram not computed.
    return run_decoder(expanded, dec_in_bias, dec_out_bias, p, adim, odim,
                       adim_p, odim_p, dec_tile)


# ----------------------------------------------------------------------------
# Pure-JAX reference (correctness sanity check; mirrors the kernels' bf16
# matmul-operand precision with f32 accumulation so tolerances stay tight)
# ----------------------------------------------------------------------------

def _reference_forward(p, text, utt, durs, pitch, energy, lmax):
    bf, f32 = jnp.bfloat16, jnp.float32
    adim = p["embed_w2"].shape[1]
    odim = p["feat_out_w"].shape[1]

    def ln(y, g, b):
        mu = y.mean(-1, keepdims=True)
        var = ((y - mu) ** 2).mean(-1, keepdims=True)
        return (y - mu) * jax.lax.rsqrt(var + 1e-5) * g + b

    h = jnp.tanh(jnp.dot(text.astype(bf), p["embed_w1"].astype(bf),
                         preferred_element_type=f32) + p["embed_b1"])
    enc = jnp.dot(h.astype(bf), p["embed_w2"].astype(bf),
                  preferred_element_type=f32) + p["embed_b2"]
    enc = enc + (pitch.astype(bf).astype(f32)
                 * p["pitch_embed_w"].astype(bf).astype(f32)) + p["pitch_embed_b"]
    enc = enc + (energy.astype(bf).astype(f32)
                 * p["energy_embed_w"].astype(bf).astype(f32)) + p["energy_embed_b"]
    enc = enc.astype(bf)
    exp = length_regulate(enc, durs, lmax).astype(f32)
    uttn = utt / jnp.maximum(jnp.linalg.norm(utt, axis=-1, keepdims=True), 1e-12)
    B, L, _ = exp.shape
    uttb = jnp.broadcast_to(uttn[:, None, :], (B, L, uttn.shape[-1]))
    din = jnp.concatenate([exp, uttb], -1).astype(bf)
    dec_in = ln(jnp.dot(din, p["dec_in_proj_w"].astype(bf),
                        preferred_element_type=f32) + p["dec_in_proj_b"],
                p["dec_in_proj_g"], p["dec_in_proj_beta"])
    before = jnp.dot(dec_in.astype(bf), p["feat_out_w"].astype(bf),
                     preferred_element_type=f32) + p["feat_out_b"]
    dout = jnp.concatenate([before, uttb], -1).astype(bf)
    enr = ln(jnp.dot(dout, p["dec_out_proj_w"].astype(bf),
                     preferred_element_type=f32) + p["dec_out_proj_b"],
             p["dec_out_proj_g"], p["dec_out_proj_beta"])
    gin = jnp.concatenate([enr, dec_in], -1).astype(bf)
    gin_pad = jnp.pad(gin, ((0, 0), (2, 2), (0, 0)))
    g = jnp.zeros((B, L, adim), f32) + p["g_proj_b"]
    for k in range(5):
        g = g + jnp.einsum("blc,cd->bld", gin_pad[:, k:k + L, :],
                           p["g_proj_w"][k].astype(bf),
                           preferred_element_type=f32)
    return before, enr, g


# ----------------------------------------------------------------------------
# Main
# ----------------------------------------------------------------------------

if __name__ == "__main__":
    B, TMAX, LMAX = 2, 24, 96
    IDIM, ADIM, ODIM, UEMB = 62, 64, 80, 64
    DEC_TILE = 32                       # 3 time tiles -> exercises halo logic

    root = jax.random.PRNGKey(0)
    kp, kt, ku, kpi, ke = jax.random.split(root, 5)

    params = init_params(kp, IDIM, ADIM, ODIM, UEMB)

    text_tensors = jax.random.normal(kt, (B, TMAX, IDIM), jnp.float32)
    utterance_embedding = jax.random.normal(ku, (B, UEMB), jnp.float32)
    gold_pitch = jax.random.normal(kpi, (B, TMAX, 1), jnp.float32)
    gold_energy = jax.random.normal(ke, (B, TMAX, 1), jnp.float32)
    # gold durations summing exactly to LMAX per utterance
    gold_durations = jnp.full((B, TMAX), LMAX // TMAX, dtype=jnp.int32)

    before, enriched, g = portaspeech_forward(
        params, text_tensors, utterance_embedding, gold_durations,
        gold_pitch, gold_energy, lmax=LMAX, dec_tile=DEC_TILE)
    jax.block_until_ready((before, enriched, g))

    assert before.shape == (B, LMAX, ODIM)
    assert enriched.shape == (B, LMAX, ODIM)
    assert g.shape == (B, LMAX, ADIM)

    # correctness sanity check against a pure-JAX reference
    rb, re_, rg = _reference_forward(params, text_tensors, utterance_embedding,
                                     gold_durations, gold_pitch, gold_energy,
                                     LMAX)
    assert jnp.allclose(before, rb, atol=3e-2, rtol=3e-2)
    assert jnp.allclose(enriched, re_, atol=3e-2, rtol=3e-2)
    assert jnp.allclose(g, rg, atol=3e-2, rtol=3e-2)

    print("KERNEL_OK")
</pallas_src>

<mosaic_0001>
module attributes {stable_mosaic.version = 11 : i64} {
  func.func private @main(%arg0: i32) attributes {dimension_semantics = [#tpu.dimension_semantics<core_parallel>], iteration_bounds = array<i64: 2>, tpu.core_type = #tpu.core_type<sc_scalar_subcore>, window_params = []} {
    return
  }
}

module attributes {stable_mosaic.version = 11 : i64} {
  func.func private @main(%arg0: i32) attributes {dimension_semantics = [#tpu.dimension_semantics<core_parallel>], iteration_bounds = array<i64: 2>, tpu.core_type = #tpu.core_type<sc_scalar_subcore>, window_params = []} {
    return
  }
}

module attributes {stable_mosaic.version = 11 : i64} {
  func.func @_encoder_kernel(%arg0: i32, %arg1: memref<48x62xbf16, #tpu.memory_space<vmem>>, %arg2: memref<48x1xf32, #tpu.memory_space<vmem>>, %arg3: memref<48x1xf32, #tpu.memory_space<vmem>>, %arg4: memref<62x128xbf16, #tpu.memory_space<vmem>>, %arg5: memref<1x128xf32, #tpu.memory_space<vmem>>, %arg6: memref<128x128xbf16, #tpu.memory_space<vmem>>, %arg7: memref<1x128xf32, #tpu.memory_space<vmem>>, %arg8: memref<48x128xbf16, #tpu.memory_space<vmem>>) attributes {dimension_semantics = [#tpu.dimension_semantics<parallel>], iteration_bounds = array<i64: 1>, scalar_prefetch = 0 : i64, scratch_operands = 0 : i64, tpu.core_type = #tpu.core_type<tc>, window_params = [{transform_indices = @transform_0, window_bounds = array<i64: 48, 62>}, {transform_indices = @transform_1, window_bounds = array<i64: 48, 1>}, {transform_indices = @transform_2, window_bounds = array<i64: 48, 1>}, {pipeline_mode = #tpu.pipeline_mode<synchronous>, transform_indices = @transform_3, window_bounds = array<i64: 62, 128>}, {pipeline_mode = #tpu.pipeline_mode<synchronous>, transform_indices = @transform_4, window_bounds = array<i64: 1, 128>}, {pipeline_mode = #tpu.pipeline_mode<synchronous>, transform_indices = @transform_5, window_bounds = array<i64: 128, 128>}, {pipeline_mode = #tpu.pipeline_mode<synchronous>, transform_indices = @transform_6, window_bounds = array<i64: 1, 128>}, {transform_indices = @transform_7, window_bounds = array<i64: 48, 128>}]} {
    %c0 = arith.constant 0 : index
    %c0_0 = arith.constant 0 : index
    %0 = vector.load %arg1[%c0, %c0_0] : memref<48x62xbf16, #tpu.memory_space<vmem>>, vector<48x62xbf16>
    %c0_1 = arith.constant 0 : index
    %c0_2 = arith.constant 0 : index
    %1 = vector.load %arg4[%c0_1, %c0_2] : memref<62x128xbf16, #tpu.memory_space<vmem>>, vector<62x128xbf16>
    %cst = arith.constant dense<0.000000e+00> : vector<48x128xf32>
    %2 = tpu.matmul %0, %1, %cst {dimension_numbers = #tpu.dot_dimension_numbers<[1], [0], [0], [1], [0, 0, 1, 1], [], []>} : vector<48x62xbf16>, vector<62x128xbf16>, vector<48x128xf32> -> vector<48x128xf32>
    %c0_3 = arith.constant 0 : index
    %c0_4 = arith.constant 0 : index
    %3 = vector.load %arg5[%c0_3, %c0_4] : memref<1x128xf32, #tpu.memory_space<vmem>>, vector<1x128xf32>
    %4 = vector.broadcast %3 : vector<1x128xf32> to vector<48x128xf32>
    %5 = arith.addf %2, %4 : vector<48x128xf32>
    %6 = math.tanh %5 : vector<48x128xf32>
    %7 = tpu.iota {dimensions = array<i32: 1>} : vector<48x128xi32>
    %c100_i32 = arith.constant 100 : i32
    %8 = vector.broadcast %c100_i32 : i32 to vector<48x128xi32>
    %9 = arith.cmpi eq, %7, %8 : vector<48x128xi32>
    %c0_5 = arith.constant 0 : index
    %c0_6 = arith.constant 0 : index
    %10 = vector.load %arg2[%c0_5, %c0_6] : memref<48x1xf32, #tpu.memory_space<vmem>>, vector<48x1xf32>
    %11 = vector.shape_cast %10 : vector<48x1xf32> to vector<48x1xf32>
    %12 = vector.broadcast %11 : vector<48x1xf32> to vector<48x128xf32>
    %13 = arith.select %9, %12, %6 : vector<48x128xi1>, vector<48x128xf32>
    %c101_i32 = arith.constant 101 : i32
    %14 = vector.broadcast %c101_i32 : i32 to vector<48x128xi32>
    %15 = arith.cmpi eq, %7, %14 : vector<48x128xi32>
    %c0_7 = arith.constant 0 : index
    %c0_8 = arith.constant 0 : index
    %16 = vector.load %arg3[%c0_7, %c0_8] : memref<48x1xf32, #tpu.memory_space<vmem>>, vector<48x1xf32>
    %17 = vector.shape_cast %16 : vector<48x1xf32> to vector<48x1xf32>
    %18 = vector.broadcast %17 : vector<48x1xf32> to vector<48x128xf32>
    %19 = arith.select %15, %18, %13 : vector<48x128xi1>, vector<48x128xf32>
    %20 = arith.truncf %19 : vector<48x128xf32> to vector<48x128xbf16>
    %c0_9 = arith.constant 0 : index
    %c0_10 = arith.constant 0 : index
    %21 = vector.load %arg6[%c0_9, %c0_10] : memref<128x128xbf16, #tpu.memory_space<vmem>>, vector<128x128xbf16>
    %cst_11 = arith.constant dense<0.000000e+00> : vector<48x128xf32>
    %22 = tpu.matmul %20, %21, %cst_11 {dimension_numbers = #tpu.dot_dimension_numbers<[1], [0], [0], [1], [0, 0, 1, 1], [], []>} : vector<48x128xbf16>, vector<128x128xbf16>, vector<48x128xf32> -> vector<48x128xf32>
    %c0_12 = arith.constant 0 : index
    %c0_13 = arith.constant 0 : index
    %23 = vector.load %arg7[%c0_12, %c0_13] : memref<1x128xf32, #tpu.memory_space<vmem>>, vector<1x128xf32>
    %24 = vector.broadcast %23 : vector<1x128xf32> to vector<48x128xf32>
    %25 = arith.addf %22, %24 : vector<48x128xf32>
    %26 = arith.truncf %25 : vector<48x128xf32> to vector<48x128xbf16>
    %c0_14 = arith.constant 0 : index
    %c0_15 = arith.constant 0 : index
    %27 = vector.load %arg8[%c0_14, %c0_15] : memref<48x128xbf16, #tpu.memory_space<vmem>>, vector<48x128xbf16>
    tpu.vector_store %arg8[%c0_14, %c0_15], %26 {strides = array<i32>} : memref<48x128xbf16, #tpu.memory_space<vmem>>, vector<48x128xbf16>,
    return
  }
  func.func @transform_0(%arg0: i32) -> (i32, i32) {
    %c0_i32 = arith.constant 0 : i32
    %c0_i32_0 = arith.constant 0 : i32
    return %arg0, %c0_i32 : i32, i32
  }
  func.func @transform_1(%arg0: i32) -> (i32, i32) {
    %c0_i32 = arith.constant 0 : i32
    %c0_i32_0 = arith.constant 0 : i32
    return %arg0, %c0_i32 : i32, i32
  }
  func.func @transform_2(%arg0: i32) -> (i32, i32) {
    %c0_i32 = arith.constant 0 : i32
    %c0_i32_0 = arith.constant 0 : i32
    return %arg0, %c0_i32 : i32, i32
  }
  func.func @transform_3(%arg0: i32) -> (i32, i32) {
    %c0_i32 = arith.constant 0 : i32
    %c0_i32_0 = arith.constant 0 : i32
    %c0_i32_1 = arith.constant 0 : i32
    return %c0_i32, %c0_i32_0 : i32, i32
  }
  func.func @transform_4(%arg0: i32) -> (i32, i32) {
    %c0_i32 = arith.constant 0 : i32
    %c0_i32_0 = arith.constant 0 : i32
    %c0_i32_1 = arith.constant 0 : i32
    return %c0_i32, %c0_i32_0 : i32, i32
  }
  func.func @transform_5(%arg0: i32) -> (i32, i32) {
    %c0_i32 = arith.constant 0 : i32
    %c0_i32_0 = arith.constant 0 : i32
    %c0_i32_1 = arith.constant 0 : i32
    return %c0_i32, %c0_i32_0 : i32, i32
  }
  func.func @transform_6(%arg0: i32) -> (i32, i32) {
    %c0_i32 = arith.constant 0 : i32
    %c0_i32_0 = arith.constant 0 : i32
    %c0_i32_1 = arith.constant 0 : i32
    return %c0_i32, %c0_i32_0 : i32, i32
  }
  func.func @transform_7(%arg0: i32) -> (i32, i32) {
    %c0_i32 = arith.constant 0 : i32
    %c0_i32_0 = arith.constant 0 : i32
    return %arg0, %c0_i32 : i32, i32
  }
}

module attributes {stable_mosaic.version = 11 : i64} {
  func.func @_decoder_kernel(%arg0: i32, %arg1: i32, %arg2: memref<1x32x128xbf16, #tpu.memory_space<vmem>>, %arg3: memref<1x1x16x128xbf16, #tpu.memory_space<vmem>>, %arg4: memref<128x128xbf16, #tpu.memory_space<vmem>>, %arg5: memref<1x1x128xf32, #tpu.memory_space<vmem>>, %arg6: memref<1x128xf32, #tpu.memory_space<vmem>>, %arg7: memref<1x128xf32, #tpu.memory_space<vmem>>, %arg8: memref<128x128xbf16, #tpu.memory_space<vmem>>, %arg9: memref<1x128xf32, #tpu.memory_space<vmem>>, %arg10: memref<128x128xbf16, #tpu.memory_space<vmem>>, %arg11: memref<1x1x128xf32, #tpu.memory_space<vmem>>, %arg12: memref<1x128xf32, #tpu.memory_space<vmem>>, %arg13: memref<1x128xf32, #tpu.memory_space<vmem>>, %arg14: memref<128x640xbf16, #tpu.memory_space<vmem>>, %arg15: memref<128x640xbf16, #tpu.memory_space<vmem>>, %arg16: memref<1x128xf32, #tpu.memory_space<vmem>>, %arg17: memref<1x32x128xf32, #tpu.memory_space<vmem>>, %arg18: memref<1x32x128xf32, #tpu.memory_space<vmem>>, %arg19: memref<1x32x128xf32, #tpu.memory_space<vmem>>) attributes {dimension_semantics = [#tpu.dimension_semantics<parallel>, #tpu.dimension_semantics<parallel>], iteration_bounds = array<i64: 2, 3>, scalar_prefetch = 0 : i64, scratch_operands = 0 : i64, tpu.core_type = #tpu.core_type<tc>, window_params = [{transform_indices = @transform_0, window_bounds = array<i64: 1, 32, 128>}, {transform_indices = @transform_1, window_bounds = array<i64: 1, 1, 16, 128>}, {pipeline_mode = #tpu.pipeline_mode<synchronous>, transform_indices = @transform_2, window_bounds = array<i64: 128, 128>}, {transform_indices = @transform_3, window_bounds = array<i64: 1, 1, 128>}, {pipeline_mode = #tpu.pipeline_mode<synchronous>, transform_indices = @transform_4, window_bounds = array<i64: 1, 128>}, {pipeline_mode = #tpu.pipeline_mode<synchronous>, transform_indices = @transform_5, window_bounds = array<i64: 1, 128>}, {pipeline_mode = #tpu.pipeline_mode<synchronous>, transform_indices = @transform_6, window_bounds = array<i64: 128, 128>}, {pipeline_mode = #tpu.pipeline_mode<synchronous>, transform_indices = @transform_7, window_bounds = array<i64: 1, 128>}, {pipeline_mode = #tpu.pipeline_mode<synchronous>, transform_indices = @transform_8, window_bounds = array<i64: 128, 128>}, {transform_indices = @transform_9, window_bounds = array<i64: 1, 1, 128>}, {pipeline_mode = #tpu.pipeline_mode<synchronous>, transform_indices = @transform_10, window_bounds = array<i64: 1, 128>}, {pipeline_mode = #tpu.pipeline_mode<synchronous>, transform_indices = @transform_11, window_bounds = array<i64: 1, 128>}, {pipeline_mode = #tpu.pipeline_mode<synchronous>, transform_indices = @transform_12, window_bounds = array<i64: 128, 640>}, {pipeline_mode = #tpu.pipeline_mode<synchronous>, transform_indices = @transform_13, window_bounds = array<i64: 128, 640>}, {pipeline_mode = #tpu.pipeline_mode<synchronous>, transform_indices = @transform_14, window_bounds = array<i64: 1, 128>}, {transform_indices = @transform_15, window_bounds = array<i64: 1, 32, 128>}, {transform_indices = @transform_16, window_bounds = array<i64: 1, 32, 128>}, {transform_indices = @transform_17, window_bounds = array<i64: 1, 32, 128>}]} {
    %c0 = arith.constant 0 : index
    %c0_0 = arith.constant 0 : index
    %c0_1 = arith.constant 0 : index
    %0 = vector.load %arg2[%c0, %c0_0, %c0_1] : memref<1x32x128xbf16, #tpu.memory_space<vmem>>, vector<1x32x128xbf16>
    %1 = vector.shape_cast %0 : vector<1x32x128xbf16> to vector<32x128xbf16>
    %c0_2 = arith.constant 0 : index
    %c0_3 = arith.constant 0 : index
    %2 = vector.load %arg4[%c0_2, %c0_3] : memref<128x128xbf16, #tpu.memory_space<vmem>>, vector<128x128xbf16>
    %cst = arith.constant dense<0.000000e+00> : vector<32x128xf32>
    %3 = tpu.matmul %1, %2, %cst {dimension_numbers = #tpu.dot_dimension_numbers<[1], [0], [0], [1], [0, 0, 1, 1], [], []>} : vector<32x128xbf16>, vector<128x128xbf16>, vector<32x128xf32> -> vector<32x128xf32>
    %c0_4 = arith.constant 0 : index
    %c0_5 = arith.constant 0 : index
    %c0_6 = arith.constant 0 : index
    %c0_7 = arith.constant 0 : index
    %4 = vector.load %arg3[%c0_4, %c0_5, %c0_6, %c0_7] : memref<1x1x16x128xbf16, #tpu.memory_space<vmem>>, vector<1x1x16x128xbf16>
    %5 = vector.shape_cast %4 : vector<1x1x16x128xbf16> to vector<16x128xbf16>
    %c0_8 = arith.constant 0 : index
    %c0_9 = arith.constant 0 : index
    %6 = vector.load %arg4[%c0_8, %c0_9] : memref<128x128xbf16, #tpu.memory_space<vmem>>, vector<128x128xbf16>
    %cst_10 = arith.constant dense<0.000000e+00> : vector<16x128xf32>
    %7 = tpu.matmul %5, %6, %cst_10 {dimension_numbers = #tpu.dot_dimension_numbers<[1], [0], [0], [1], [0, 0, 1, 1], [], []>} : vector<16x128xbf16>, vector<128x128xbf16>, vector<16x128xf32> -> vector<16x128xf32>
    %8 = vector.extract_strided_slice %7 {offsets = [0, 0], sizes = [8, 128], strides = [1, 1]} : vector<16x128xf32> to vector<8x128xf32>
    %9 = vector.extract_strided_slice %7 {offsets = [8, 0], sizes = [8, 128], strides = [1, 1]} : vector<16x128xf32> to vector<8x128xf32>
    %10 = tpu.concatenate %8, %3, %9 in 0 : vector<8x128xf32>, vector<32x128xf32>, vector<8x128xf32> -> vector<48x128xf32>
    %c0_11 = arith.constant 0 : index
    %c0_12 = arith.constant 0 : index
    %c0_13 = arith.constant 0 : index
    %11 = vector.load %arg5[%c0_11, %c0_12, %c0_13] : memref<1x1x128xf32, #tpu.memory_space<vmem>>, vector<1x1x128xf32>
    %12 = vector.shape_cast %11 : vector<1x1x128xf32> to vector<1x128xf32>
    %13 = vector.broadcast %12 : vector<1x128xf32> to vector<48x128xf32>
    %14 = arith.addf %10, %13 : vector<48x128xf32>
    %c0_14 = arith.constant 0 : index
    %c0_15 = arith.constant 0 : index
    %15 = vector.load %arg6[%c0_14, %c0_15] : memref<1x128xf32, #tpu.memory_space<vmem>>, vector<1x128xf32>
    %c0_16 = arith.constant 0 : index
    %c0_17 = arith.constant 0 : index
    %16 = vector.load %arg7[%c0_16, %c0_17] : memref<1x128xf32, #tpu.memory_space<vmem>>, vector<1x128xf32>
    %cst_18 = arith.constant dense<0.000000e+00> : vector<48xf32>
    %17 = vector.multi_reduction <add>, %14, %cst_18 [1] : vector<48x128xf32> to vector<48xf32>
    %18 = vector.shape_cast %17 : vector<48xf32> to vector<48x1xf32>
    %cst_19 = arith.constant 1.562500e-02 : f32
    %19 = vector.broadcast %cst_19 : f32 to vector<48x1xf32>
    %20 = arith.mulf %18, %19 : vector<48x1xf32>
    %21 = arith.mulf %14, %14 : vector<48x128xf32>
    %cst_20 = arith.constant dense<0.000000e+00> : vector<48xf32>
    %22 = vector.multi_reduction <add>, %21, %cst_20 [1] : vector<48x128xf32> to vector<48xf32>
    %23 = vector.shape_cast %22 : vector<48xf32> to vector<48x1xf32>
    %cst_21 = arith.constant 1.562500e-02 : f32
    %24 = vector.broadcast %cst_21 : f32 to vector<48x1xf32>
    %25 = arith.mulf %23, %24 : vector<48x1xf32>
    %26 = arith.mulf %20, %20 : vector<48x1xf32>
    %27 = arith.subf %25, %26 : vector<48x1xf32>
    %28 = vector.broadcast %20 : vector<48x1xf32> to vector<48x128xf32>
    %29 = arith.subf %14, %28 : vector<48x128xf32>
    %cst_22 = arith.constant 9.99999974E-6 : f32
    %30 = vector.broadcast %cst_22 : f32 to vector<48x1xf32>
    %31 = arith.addf %27, %30 : vector<48x1xf32>
    %32 = math.rsqrt %31 : vector<48x1xf32>
    %33 = vector.broadcast %32 : vector<48x1xf32> to vector<48x128xf32>
    %34 = arith.mulf %29, %33 : vector<48x128xf32>
    %35 = vector.broadcast %15 : vector<1x128xf32> to vector<48x128xf32>
    %36 = arith.mulf %34, %35 : vector<48x128xf32>
    %37 = vector.broadcast %16 : vector<1x128xf32> to vector<48x128xf32>
    %38 = arith.addf %36, %37 : vector<48x128xf32>
    %39 = tpu.iota {dimensions = array<i32: 0>} : vector<48x1xi32>
    %c0_i32 = arith.constant 0 : i32
    %40 = arith.cmpi eq, %arg1, %c0_i32 : i32
    %c8_i32 = arith.constant 8 : i32
    %41 = vector.broadcast %c8_i32 : i32 to vector<48x1xi32>
    %42 = arith.cmpi slt, %39, %41 : vector<48x1xi32>
    %43 = vector.broadcast %40 : i1 to vector<48x1xi1>
    %44 = arith.andi %43, %42 : vector<48x1xi1>
    %c2_i32 = arith.constant 2 : i32
    %45 = arith.cmpi eq, %arg1, %c2_i32 : i32
    %c40_i32 = arith.constant 40 : i32
    %46 = vector.broadcast %c40_i32 : i32 to vector<48x1xi32>
    %47 = arith.cmpi sge, %39, %46 : vector<48x1xi32>
    %48 = vector.broadcast %45 : i1 to vector<48x1xi1>
    %49 = arith.andi %48, %47 : vector<48x1xi1>
    %50 = arith.ori %44, %49 : vector<48x1xi1>
    %cst_23 = arith.constant 0.000000e+00 : f32
    %51 = vector.shape_cast %50 : vector<48x1xi1> to vector<48x1xi1>
    %52 = vector.broadcast %51 : vector<48x1xi1> to vector<48x128xi1>
    %53 = vector.broadcast %cst_23 : f32 to vector<48x128xf32>
    %54 = arith.select %52, %53, %38 : vector<48x128xi1>, vector<48x128xf32>
    %55 = arith.truncf %54 : vector<48x128xf32> to vector<48x128xbf16>
    %c0_24 = arith.constant 0 : index
    %c0_25 = arith.constant 0 : index
    %56 = vector.load %arg8[%c0_24, %c0_25] : memref<128x128xbf16, #tpu.memory_space<vmem>>, vector<128x128xbf16>
    %cst_26 = arith.constant dense<0.000000e+00> : vector<48x128xf32>
    %57 = tpu.matmul %55, %56, %cst_26 {dimension_numbers = #tpu.dot_dimension_numbers<[1], [0], [0], [1], [0, 0, 1, 1], [], []>} : vector<48x128xbf16>, vector<128x128xbf16>, vector<48x128xf32> -> vector<48x128xf32>
    %c0_27 = arith.constant 0 : index
    %c0_28 = arith.constant 0 : index
    %58 = vector.load %arg9[%c0_27, %c0_28] : memref<1x128xf32, #tpu.memory_space<vmem>>, vector<1x128xf32>
    %59 = vector.broadcast %58 : vector<1x128xf32> to vector<48x128xf32>
    %60 = arith.addf %57, %59 : vector<48x128xf32>
    %61 = vector.extract_strided_slice %60 {offsets = [8, 0], sizes = [32, 128], strides = [1, 1]} : vector<48x128xf32> to vector<32x128xf32>
    %c0_29 = arith.constant 0 : index
    %c0_30 = arith.constant 0 : index
    %c0_31 = arith.constant 0 : index
    %62 = vector.load %arg17[%c0_29, %c0_30, %c0_31] : memref<1x32x128xf32, #tpu.memory_space<vmem>>, vector<1x32x128xf32>
    %63 = vector.shape_cast %62 : vector<1x32x128xf32> to vector<32x128xf32>
    %64 = vector.shape_cast %61 : vector<32x128xf32> to vector<1x32x128xf32>
    tpu.vector_store %arg17[%c0_29, %c0_30, %c0_31], %64 {strides = array<i32>} : memref<1x32x128xf32, #tpu.memory_space<vmem>>, vector<1x32x128xf32>,
    %65 = arith.truncf %60 : vector<48x128xf32> to vector<48x128xbf16>
    %c0_32 = arith.constant 0 : index
    %c0_33 = arith.constant 0 : index
    %66 = vector.load %arg10[%c0_32, %c0_33] : memref<128x128xbf16, #tpu.memory_space<vmem>>, vector<128x128xbf16>
    %cst_34 = arith.constant dense<0.000000e+00> : vector<48x128xf32>
    %67 = tpu.matmul %65, %66, %cst_34 {dimension_numbers = #tpu.dot_dimension_numbers<[1], [0], [0], [1], [0, 0, 1, 1], [], []>} : vector<48x128xbf16>, vector<128x128xbf16>, vector<48x128xf32> -> vector<48x128xf32>
    %c0_35 = arith.constant 0 : index
    %c0_36 = arith.constant 0 : index
    %c0_37 = arith.constant 0 : index
    %68 = vector.load %arg11[%c0_35, %c0_36, %c0_37] : memref<1x1x128xf32, #tpu.memory_space<vmem>>, vector<1x1x128xf32>
    %69 = vector.shape_cast %68 : vector<1x1x128xf32> to vector<1x128xf32>
    %70 = vector.broadcast %69 : vector<1x128xf32> to vector<48x128xf32>
    %71 = arith.addf %67, %70 : vector<48x128xf32>
    %c0_38 = arith.constant 0 : index
    %c0_39 = arith.constant 0 : index
    %72 = vector.load %arg12[%c0_38, %c0_39] : memref<1x128xf32, #tpu.memory_space<vmem>>, vector<1x128xf32>
    %c0_40 = arith.constant 0 : index
    %c0_41 = arith.constant 0 : index
    %73 = vector.load %arg13[%c0_40, %c0_41] : memref<1x128xf32, #tpu.memory_space<vmem>>, vector<1x128xf32>
    %cst_42 = arith.constant dense<0.000000e+00> : vector<48xf32>
    %74 = vector.multi_reduction <add>, %71, %cst_42 [1] : vector<48x128xf32> to vector<48xf32>
    %75 = vector.shape_cast %74 : vector<48xf32> to vector<48x1xf32>
    %cst_43 = arith.constant 1.250000e-02 : f32
    %76 = vector.broadcast %cst_43 : f32 to vector<48x1xf32>
    %77 = arith.mulf %75, %76 : vector<48x1xf32>
    %78 = arith.mulf %71, %71 : vector<48x128xf32>
    %cst_44 = arith.constant dense<0.000000e+00> : vector<48xf32>
    %79 = vector.multi_reduction <add>, %78, %cst_44 [1] : vector<48x128xf32> to vector<48xf32>
    %80 = vector.shape_cast %79 : vector<48xf32> to vector<48x1xf32>
    %cst_45 = arith.constant 1.250000e-02 : f32
    %81 = vector.broadcast %cst_45 : f32 to vector<48x1xf32>
    %82 = arith.mulf %80, %81 : vector<48x1xf32>
    %83 = arith.mulf %77, %77 : vector<48x1xf32>
    %84 = arith.subf %82, %83 : vector<48x1xf32>
    %85 = vector.broadcast %77 : vector<48x1xf32> to vector<48x128xf32>
    %86 = arith.subf %71, %85 : vector<48x128xf32>
    %cst_46 = arith.constant 9.99999974E-6 : f32
    %87 = vector.broadcast %cst_46 : f32 to vector<48x1xf32>
    %88 = arith.addf %84, %87 : vector<48x1xf32>
    %89 = math.rsqrt %88 : vector<48x1xf32>
    %90 = vector.broadcast %89 : vector<48x1xf32> to vector<48x128xf32>
    %91 = arith.mulf %86, %90 : vector<48x128xf32>
    %92 = vector.broadcast %72 : vector<1x128xf32> to vector<48x128xf32>
    %93 = arith.mulf %91, %92 : vector<48x128xf32>
    %94 = vector.broadcast %73 : vector<1x128xf32> to vector<48x128xf32>
    %95 = arith.addf %93, %94 : vector<48x128xf32>
    %96 = vector.extract_strided_slice %95 {offsets = [8, 0], sizes = [32, 128], strides = [1, 1]} : vector<48x128xf32> to vector<32x128xf32>
    %c0_47 = arith.constant 0 : index
    %c0_48 = arith.constant 0 : index
    %c0_49 = arith.constant 0 : index
    %97 = vector.load %arg18[%c0_47, %c0_48, %c0_49] : memref<1x32x128xf32, #tpu.memory_space<vmem>>, vector<1x32x128xf32>
    %98 = vector.shape_cast %97 : vector<1x32x128xf32> to vector<32x128xf32>
    %99 = vector.shape_cast %96 : vector<32x128xf32> to vector<1x32x128xf32>
    tpu.vector_store %arg18[%c0_47, %c0_48, %c0_49], %99 {strides = array<i32>} : memref<1x32x128xf32, #tpu.memory_space<vmem>>, vector<1x32x128xf32>,
    %cst_50 = arith.constant 0.000000e+00 : f32
    %100 = vector.shape_cast %50 : vector<48x1xi1> to vector<48x1xi1>
    %101 = vector.broadcast %100 : vector<48x1xi1> to vector<48x128xi1>
    %102 = vector.broadcast %cst_50 : f32 to vector<48x128xf32>
    %103 = arith.select %101, %102, %95 : vector<48x128xi1>, vector<48x128xf32>
    %104 = arith.truncf %103 : vector<48x128xf32> to vector<48x128xbf16>
    %c0_51 = arith.constant 0 : index
    %c0_52 = arith.constant 0 : index
    %105 = vector.load %arg14[%c0_51, %c0_52] : memref<128x640xbf16, #tpu.memory_space<vmem>>, vector<128x640xbf16>
    %cst_53 = arith.constant dense<0.000000e+00> : vector<48x640xf32>
    %106 = tpu.matmul %104, %105, %cst_53 {dimension_numbers = #tpu.dot_dimension_numbers<[1], [0], [0], [1], [0, 0, 1, 1], [], []>} : vector<48x128xbf16>, vector<128x640xbf16>, vector<48x640xf32> -> vector<48x640xf32>
    %c0_54 = arith.constant 0 : index
    %c0_55 = arith.constant 0 : index
    %107 = vector.load %arg15[%c0_54, %c0_55] : memref<128x640xbf16, #tpu.memory_space<vmem>>, vector<128x640xbf16>
    %cst_56 = arith.constant dense<0.000000e+00> : vector<48x640xf32>
    %108 = tpu.matmul %55, %107, %cst_56 {dimension_numbers = #tpu.dot_dimension_numbers<[1], [0], [0], [1], [0, 0, 1, 1], [], []>} : vector<48x128xbf16>, vector<128x640xbf16>, vector<48x640xf32> -> vector<48x640xf32>
    %109 = arith.addf %106, %108 : vector<48x640xf32>
    %cst_57 = arith.constant 0.000000e+00 : f32
    %110 = vector.broadcast %cst_57 : f32 to vector<32x128xf32>
    %c0_58 = arith.constant 0 : index
    %c0_59 = arith.constant 0 : index
    %111 = vector.load %arg16[%c0_58, %c0_59] : memref<1x128xf32, #tpu.memory_space<vmem>>, vector<1x128xf32>
    %112 = vector.broadcast %111 : vector<1x128xf32> to vector<32x128xf32>
    %113 = arith.addf %110, %112 : vector<32x128xf32>
    %114 = vector.extract_strided_slice %109 {offsets = [6, 0], sizes = [32, 128], strides = [1, 1]} : vector<48x640xf32> to vector<32x128xf32>
    %115 = arith.addf %113, %114 : vector<32x128xf32>
    %116 = vector.extract_strided_slice %109 {offsets = [7, 128], sizes = [32, 128], strides = [1, 1]} : vector<48x640xf32> to vector<32x128xf32>
    %117 = arith.addf %115, %116 : vector<32x128xf32>
    %118 = vector.extract_strided_slice %109 {offsets = [8, 256], sizes = [32, 128], strides = [1, 1]} : vector<48x640xf32> to vector<32x128xf32>
    %119 = arith.addf %117, %118 : vector<32x128xf32>
    %120 = vector.extract_strided_slice %109 {offsets = [9, 384], sizes = [32, 128], strides = [1, 1]} : vector<48x640xf32> to vector<32x128xf32>
    %121 = arith.addf %119, %120 : vector<32x128xf32>
    %122 = vector.extract_strided_slice %109 {offsets = [10, 512], sizes = [32, 128], strides = [1, 1]} : vector<48x640xf32> to vector<32x128xf32>
    %123 = arith.addf %121, %122 : vector<32x128xf32>
    %c0_60 = arith.constant 0 : index
    %c0_61 = arith.constant 0 : index
    %c0_62 = arith.constant 0 : index
    %124 = vector.load %arg19[%c0_60, %c0_61, %c0_62] : memref<1x32x128xf32, #tpu.memory_space<vmem>>, vector<1x32x128xf32>
    %125 = vector.shape_cast %124 : vector<1x32x128xf32> to vector<32x128xf32>
    %126 = vector.shape_cast %123 : vector<32x128xf32> to vector<1x32x128xf32>
    tpu.vector_store %arg19[%c0_60, %c0_61, %c0_62], %126 {strides = array<i32>} : memref<1x32x128xf32, #tpu.memory_space<vmem>>, vector<1x32x128xf32>,
    return
  }
  func.func @transform_0(%arg0: i32, %arg1: i32) -> (i32, i32, i32) {
    %c0_i32 = arith.constant 0 : i32
    %c0_i32_0 = arith.constant 0 : i32
    return %arg0, %arg1, %c0_i32 : i32, i32, i32
  }
  func.func @transform_1(%arg0: i32, %arg1: i32) -> (i32, i32, i32, i32) {
    %c0_i32 = arith.constant 0 : i32
    %c0_i32_0 = arith.constant 0 : i32
    %c0_i32_1 = arith.constant 0 : i32
    return %arg0, %arg1, %c0_i32, %c0_i32_0 : i32, i32, i32, i32
  }
  func.func @transform_2(%arg0: i32, %arg1: i32) -> (i32, i32) {
    %c0_i32 = arith.constant 0 : i32
    %c0_i32_0 = arith.constant 0 : i32
    %c0_i32_1 = arith.constant 0 : i32
    return %c0_i32, %c0_i32_0 : i32, i32
  }
  func.func @transform_3(%arg0: i32, %arg1: i32) -> (i32, i32, i32) {
    %c0_i32 = arith.constant 0 : i32
    %c0_i32_0 = arith.constant 0 : i32
    %c0_i32_1 = arith.constant 0 : i32
    return %arg0, %c0_i32, %c0_i32_0 : i32, i32, i32
  }
  func.func @transform_4(%arg0: i32, %arg1: i32) -> (i32, i32) {
    %c0_i32 = arith.constant 0 : i32
    %c0_i32_0 = arith.constant 0 : i32
    %c0_i32_1 = arith.constant 0 : i32
    return %c0_i32, %c0_i32_0 : i32, i32
  }
  func.func @transform_5(%arg0: i32, %arg1: i32) -> (i32, i32) {
    %c0_i32 = arith.constant 0 : i32
    %c0_i32_0 = arith.constant 0 : i32
    %c0_i32_1 = arith.constant 0 : i32
    return %c0_i32, %c0_i32_0 : i32, i32
  }
  func.func @transform_6(%arg0: i32, %arg1: i32) -> (i32, i32) {
    %c0_i32 = arith.constant 0 : i32
    %c0_i32_0 = arith.constant 0 : i32
    %c0_i32_1 = arith.constant 0 : i32
    return %c0_i32, %c0_i32_0 : i32, i32
  }
  func.func @transform_7(%arg0: i32, %arg1: i32) -> (i32, i32) {
    %c0_i32 = arith.constant 0 : i32
    %c0_i32_0 = arith.constant 0 : i32
    %c0_i32_1 = arith.constant 0 : i32
    return %c0_i32, %c0_i32_0 : i32, i32
  }
  func.func @transform_8(%arg0: i32, %arg1: i32) -> (i32, i32) {
    %c0_i32 = arith.constant 0 : i32
    %c0_i32_0 = arith.constant 0 : i32
    %c0_i32_1 = arith.constant 0 : i32
    return %c0_i32, %c0_i32_0 : i32, i32
  }
  func.func @transform_9(%arg0: i32, %arg1: i32) -> (i32, i32, i32) {
    %c0_i32 = arith.constant 0 : i32
    %c0_i32_0 = arith.constant 0 : i32
    %c0_i32_1 = arith.constant 0 : i32
    return %arg0, %c0_i32, %c0_i32_0 : i32, i32, i32
  }
  func.func @transform_10(%arg0: i32, %arg1: i32) -> (i32, i32) {
    %c0_i32 = arith.constant 0 : i32
    %c0_i32_0 = arith.constant 0 : i32
    %c0_i32_1 = arith.constant 0 : i32
    return %c0_i32, %c0_i32_0 : i32, i32
  }
  func.func @transform_11(%arg0: i32, %arg1: i32) -> (i32, i32) {
    %c0_i32 = arith.constant 0 : i32
    %c0_i32_0 = arith.constant 0 : i32
    %c0_i32_1 = arith.constant 0 : i32
    return %c0_i32, %c0_i32_0 : i32, i32
  }
  func.func @transform_12(%arg0: i32, %arg1: i32) -> (i32, i32) {
    %c0_i32 = arith.constant 0 : i32
    %c0_i32_0 = arith.constant 0 : i32
    %c0_i32_1 = arith.constant 0 : i32
    return %c0_i32, %c0_i32_0 : i32, i32
  }
  func.func @transform_13(%arg0: i32, %arg1: i32) -> (i32, i32) {
    %c0_i32 = arith.constant 0 : i32
    %c0_i32_0 = arith.constant 0 : i32
    %c0_i32_1 = arith.constant 0 : i32
    return %c0_i32, %c0_i32_0 : i32, i32
  }
  func.func @transform_14(%arg0: i32, %arg1: i32) -> (i32, i32) {
    %c0_i32 = arith.constant 0 : i32
    %c0_i32_0 = arith.constant 0 : i32
    %c0_i32_1 = arith.constant 0 : i32
    return %c0_i32, %c0_i32_0 : i32, i32
  }
  func.func @transform_15(%arg0: i32, %arg1: i32) -> (i32, i32, i32) {
    %c0_i32 = arith.constant 0 : i32
    %c0_i32_0 = arith.constant 0 : i32
    return %arg0, %arg1, %c0_i32 : i32, i32, i32
  }
  func.func @transform_16(%arg0: i32, %arg1: i32) -> (i32, i32, i32) {
    %c0_i32 = arith.constant 0 : i32
    %c0_i32_0 = arith.constant 0 : i32
    return %arg0, %arg1, %c0_i32 : i32, i32, i32
  }
  func.func @transform_17(%arg0: i32, %arg1: i32) -> (i32, i32, i32) {
    %c0_i32 = arith.constant 0 : i32
    %c0_i32_0 = arith.constant 0 : i32
    return %arg0, %arg1, %c0_i32 : i32, i32, i32
  }
}

</mosaic_0001>

<bundles_post_ra>
// kernel: portaspeech_forward.2
= control target key start
LH: loop header
LB: loop body
LE: loop exit
PB: predicated region body
PF: predicated region fallthrough
CT: control target
= control target key end

     0   :  { %v593_v0 = vmov 0.0   ;;  %vm594_vm0 = vmmov 0   ;;  %v595_v2 = vmov 0   ;;  %vm96_vm1 = vcmask 1046528   ;;  %s772_s3 = inlined_call_operand.vmem [shape: bf16[62,128], index: 3, kind: input, shape index: {}]   ;;  %s773_s0 = inlined_call_operand.vmem [shape: bf16[48,62], index: 0, kind: input, shape index: {}]   ;;  %s774_s1 = inlined_call_operand.vmem [shape: f32[48,1], index: 1, kind: input, shape index: {}]   ;;  %s775_s2 = inlined_call_operand.vmem [shape: f32[48,1], index: 2, kind: input, shape index: {}]   ;;  %s776_s5 = inlined_call_operand.vmem [shape: bf16[128,128], index: 5, kind: input, shape index: {}]   ;;  %s777_s4 = inlined_call_operand.vmem [shape: f32[1,128], index: 4, kind: input, shape index: {}]   ;;  %s778_s6 = inlined_call_operand.vmem [shape: f32[1,128], index: 6, kind: input, shape index: {}]   ;;  %s779_s7 = inlined_call_operand.vmem [shape: bf16[48,128], index: 7, kind: output, shape index: {}]  }
   0x1   :  { %483 = vmatprep.subr.bf16.mxu0 %v593_v0  ;;  %v566_v1 = vld [vmem:[%s772_s3] sm:$0xff]   ;;  %491 = vmatprep.mubr.msk.bf16.mxu0 %vm594_vm0, %v593_v0  ;;  %v567_v3 = vld [vmem:[%s772_s3 + $0x8] sm:$0xff]   ;;  %v568_v4 = vld [vmem:[%s772_s3 + $0x10] sm:$0xff]   ;;  %vm86_vm2 = vcmask 506880   ;;  %v163_v41 = vlaneseq }
   0x2   :  { %534 = vset.pattern.permute.xlu0 %v595_v2  ;;  %545 = vset.pattern.permute.xlu1 %v595_v2  ;;  %v569_v5 = vld [vmem:[%s772_s3 + $0x18] sm:$0x7f]   ;;  %v166_v6 = vld [vmem:[%s774_s1] sm:$0xff]  ;;  %v167_v7 = vld [vmem:[%s774_s1 + $0x8] sm:$0xff] }
   0x3   :  { %484 = vmatpush3.bf16.msra.mxu0 %v566_v1  ;;  %503 = vmatprep.subr.bf16.mxu1 %v593_v0  ;;  %v209_v8 = vld [vmem:[%s775_s2] sm:$0xff]  ;;  %v535_v9 = vpack.i.bf16 %v167_v7, %v166_v6  ;;  %v210_v10 = vld [vmem:[%s775_s2 + $0x8] sm:$0xff]  ;;  %v168_v11 = vld [vmem:[%s774_s1 + $0x10] sm:$0xff]  ;;  %v98_v20 = vsel %vm96_vm1, %v569_v5, 0  ;;  %v164_v44 = vand.u32 127, %v163_v41 }
   0x4   :  { %485 = vmatprep.subr.bf16.mxu0 %v593_v0  ;;  %519 = vmatprep.mubr.msk.bf16.mxu1 %vm594_vm0, %v593_v0  ;;  %v169_v12 = vld [vmem:[%s774_s1 + $0x18] sm:$0xff]  ;;  %v170_v14 = vld [vmem:[%s774_s1 + $0x20] sm:$0xff]  ;;  %v211_v15 = vld [vmem:[%s775_s2 + $0x10] sm:$0xff]  ;;  %v540_v16 = vpack.i.bf16 %v210_v10, %v209_v8 }
   0x5   :  { %v546_v13 = vpack.i.bf16 %v169_v12, %v168_v11  ;;  %536 = vperm.xlu0 %534, %v535_v9   ;;  %v171_v17 = vld [vmem:[%s774_s1 + $0x28] sm:$0xff]  ;;  %v212_v18 = vld [vmem:[%s775_s2 + $0x18] sm:$0xff]  ;;  %v213_v19 = vld [vmem:[%s775_s2 + $0x20] sm:$0xff]  ;;  %vm165_vm3 = vcmp.eq.s32.totalorder %v164_v44, 100  ;;  %vm208_vm4 = vcmp.eq.s32.totalorder %v164_v44, 101 }
   0x6   :  { %v570_v21 = vld [vmem:[%s773_s0] sm:$0xff]   ;;  %v551_v22 = vpack.i.bf16 %v212_v18, %v211_v15  ;;  %v214_v24 = vld [vmem:[%s775_s2 + $0x28] sm:$0xff]  ;;  %v556_v26 = vpack.i.bf16 %v171_v17, %v170_v14  ;;  %v575_v28 = vld [vmem:[%s776_s5 + $0x10] sm:$0xff]  }
   0x7   :  { %486 = vmatpush3.bf16.msra.mxu0 %v567_v3  ;;  %547 = vperm.xlu1 %545, %v546_v13   ;;  %v573_v23 = vld [vmem:[%s776_s5] sm:$0xff]   ;;  %v574_v25 = vld [vmem:[%s776_s5 + $0x8] sm:$0xff]   ;;  %v561_v27 = vpack.i.bf16 %v214_v24, %v213_v19  ;;  %v572_v30 = vld [vmem:[%s773_s0 + $0x10] sm:$0xff]  }
   0x8   :  { %487 = vmatprep.subr.bf16.mxu0 %v593_v0  ;;  %504 = vmatpush3.bf16.msra.mxu1 %v573_v23  ;;  %v571_v29 = vld [vmem:[%s773_s0 + $0x8] sm:$0xff]   ;;  %v576_v31 = vld [vmem:[%s776_s5 + $0x18] sm:$0xff]   ;;  %v577_v32 = vld [vmem:[%s776_s5 + $0x20] sm:$0xff]  }
   0x9   :  { %541 = vperm.xlu0 %534, %v540_v16   ;;  %505 = vmatprep.subr.bf16.mxu1 %v593_v0  ;;  %v578_v33 = vld [vmem:[%s776_s5 + $0x28] sm:$0xff]   ;;  %v579_v34 = vld [vmem:[%s776_s5 + $0x30] sm:$0xff]   ;;  %v580_v35 = vld [vmem:[%s776_s5 + $0x38] sm:$0xff]  }
   0xa   :  { %v416_v36 = vld [vmem:[%s777_s4] ss:$0 sm:$0xff] }
   0xb   :  { %488 = vmatpush3.bf16.msra.mxu0 %v568_v4  ;;  %552 = vperm.xlu1 %545, %v551_v22  }
   0xc   :  { %489 = vmatprep.subr.bf16.mxu0 %v593_v0  ;;  %506 = vmatpush3.bf16.msra.mxu1 %v574_v25 }
   0xd   :  { %557 = vperm.xlu0 %534, %v556_v26   ;;  %507 = vmatprep.subr.bf16.mxu1 %v593_v0 }
   0xf   :  { %490 = vmatpush3.bf16.msra.mxu0 %v98_v20  ;;  %562 = vperm.xlu1 %545, %v561_v27  }
  0x10   :  { %508 = vmatpush3.bf16.msra.mxu1 %v575_v28 }
  0x11   :  { %509 = vmatprep.subr.bf16.mxu1 %v593_v0 }
  0x12   :  { %492 = vmatmul.mubr.msk.bf16.vlgmr.msra.gmra.mrb[0].mxu0 %vm86_vm2, %v570_v21 }
  0x13   :  { %495 = vmatprep.mubr.msk.bf16.mxu0 %vm594_vm0, %v593_v0 }
  0x14   :  { %510 = vmatpush3.bf16.msra.mxu1 %v576_v31 }
  0x15   :  { %511 = vmatprep.subr.bf16.mxu1 %v593_v0 }
  0x18   :  { %512 = vmatpush3.bf16.msra.mxu1 %v577_v32 }
  0x19   :  { %513 = vmatprep.subr.bf16.mxu1 %v593_v0 }
  0x1a   :  { %496 = vmatmul.mubr.msk.bf16.gmra.mrb[4].mxu0 %vm86_vm2, %v571_v29 }
  0x1b   :  { %499 = vmatprep.mubr.msk.bf16.mxu0 %vm594_vm0, %v593_v0 }
  0x1c   :  { %514 = vmatpush3.bf16.msra.mxu1 %v578_v33  ;;  %v427_v33 = vld [vmem:[%s778_s6] ss:$0 sm:$0xff] }
  0x1d   :  { %515 = vmatprep.subr.bf16.mxu1 %v593_v0 }
  0x20   :  { %516 = vmatpush3.bf16.msra.mxu1 %v579_v34 }
  0x21   :  { %517 = vmatprep.subr.bf16.mxu1 %v593_v0 }
  0x22   :  { %500 = vmatmul.mubr.msk.bf16.gmra.mrb[8].mxu0 %vm86_vm2, %v572_v30 }
  0x24   :  { %518 = vmatpush3.bf16.msra.mxu1 %v580_v35 }
  0x84   :  { %v537_v45 = vpop.permute.xlu0 %536 }
  0x85   :  { %v538_v49 = vunpack.i.l.bf16 %v537_v45  ;;  %v539_v54 = vunpack.i.h.bf16 %v537_v45 }
  0x86   :  { %v548_v60 = vpop.permute.xlu1 %547 }
  0x87   :  { %v549_v4 = vunpack.i.l.bf16 %v548_v60  ;;  %v550_v10 = vunpack.i.h.bf16 %v548_v60 }
  0x88   :  { %v542_v56 = vpop.permute.xlu0 %541 }
  0x89   :  { %v544_v58 = vunpack.i.h.bf16 %v542_v56  ;;  %v543_v59 = vunpack.i.l.bf16 %v542_v56 }
  0x8a   :  { %v553_v12 = vpop.permute.xlu1 %552 }
  0x8b   :  { %v555_v14 = vunpack.i.h.bf16 %v553_v12  ;;  %v554_v15 = vunpack.i.l.bf16 %v553_v12 }
  0x8c   :  { %v558_v17 = vpop.permute.xlu0 %557 }
  0x8d   :  { %v559_v21 = vunpack.i.l.bf16 %v558_v17  ;;  %v560_v24 = vunpack.i.h.bf16 %v558_v17 }
  0x8e   :  { %v563_v22 = vpop.permute.xlu1 %562 }
  0x8f   :  { %v565_v27 = vunpack.i.h.bf16 %v563_v22  ;;  %v564_v28 = vunpack.i.l.bf16 %v563_v22 }
  0xe5   :  { %v134_v37 = vpop.f32.mrb[0].mxu0 }
  0xe6   :  { %v135_v38 = vadd.f32 %v416_v36, %v134_v37  ;;  %v493_v39 = vpop.f32.mrb[1].mxu0 }
  0xe7   :  { %v137_v40 = vpop.f32.mrb[2].mxu0 }
  0xe8   :  { %581 = vtanh.f32 %v135_v38  ;;  %v138_v42 = vadd.f32 %v416_v36, %v137_v40  ;;  %v494_v43 = vpop.f32.mrb[3].mxu0 }
  0xea   :  { %583 = vtanh.f32 %v138_v42 }
  0xed   :  { %v142_v46 = vpop.f32.mrb[4].mxu0 }
  0xee   :  { %v143_v47 = vadd.f32 %v416_v36, %v142_v46  ;;  %v497_v48 = vpop.f32.mrb[5].mxu0 }
  0xef   :  { %v145_v50 = vpop.f32.mrb[6].mxu0 }
  0xf0   :  { %585 = vtanh.f32 %v143_v47  ;;  %v146_v51 = vadd.f32 %v416_v36, %v145_v50  ;;  %v498_v52 = vpop.f32.mrb[7].mxu0 }
  0xf2   :  { %v582_v53 = vpop.eup %581  ;;  %587 = vtanh.f32 %v146_v51 }
  0xf3   :  { %v202_v55 = vsel %vm165_vm3, %v538_v49, %v582_v53 }
  0xf4   :  { %v584_v57 = vpop.eup %583  ;;  %v245_v2 = vsel %vm208_vm4, %v543_v59, %v202_v55 }
  0xf5   :  { %v150_v61 = vpop.f32.mrb[8].mxu0  ;;  %v203_v62 = vsel %vm165_vm3, %v539_v54, %v584_v57 }
  0xf6   :  { %v151_v63 = vadd.f32 %v416_v36, %v150_v61  ;;  %v501_v1 = vpop.f32.mrb[9].mxu0  ;;  %v246_v3 = vsel %vm208_vm4, %v544_v58, %v203_v62 }
  0xf7   :  { %v153_v5 = vpop.f32.mrb[10].mxu0  ;;  %v251_v6 = vpack.c.bf16 %v246_v3, %v245_v2 }
  0xf8   :  { %589 = vtanh.f32 %v151_v63  ;;  %v154_v7 = vadd.f32 %v416_v36, %v153_v5  ;;  %v502_v8 = vpop.f32.mrb[11].mxu0 }
  0xf9   :  { %520 = vmatmul.mubr.bf16.vlgmr.msra.gmra.mrb[0].mxu1 %v251_v6 }
  0xfa   :  { %v586_v9 = vpop.eup %585  ;;  %591 = vtanh.f32 %v154_v7  ;;  %523 = vmatprep.mubr.msk.bf16.mxu1 %vm594_vm0, %v593_v0 }
  0xfb   :  { %v204_v11 = vsel %vm165_vm3, %v549_v4, %v586_v9 }
  0xfc   :  { %v588_v13 = vpop.eup %587  ;;  %v247_v18 = vsel %vm208_vm4, %v554_v15, %v204_v11 }
  0xfd   :  { %v205_v16 = vsel %vm165_vm3, %v550_v10, %v588_v13 }
  0xfe   :  { %v248_v19 = vsel %vm208_vm4, %v555_v14, %v205_v16 }
  0xff   :  { %v252_v20 = vpack.c.bf16 %v248_v19, %v247_v18 }
 0x101   :  { %524 = vmatmul.mubr.bf16.gmra.mrb[4].mxu1 %v252_v20 }
 0x102   :  { %v590_v23 = vpop.eup %589  ;;  %527 = vmatprep.mubr.msk.bf16.mxu1 %vm594_vm0, %v593_v0 }
 0x103   :  { %v206_v25 = vsel %vm165_vm3, %v559_v21, %v590_v23 }
 0x104   :  { %v592_v26 = vpop.eup %591  ;;  %v249_v30 = vsel %vm208_vm4, %v564_v28, %v206_v25 }
 0x105   :  { %v207_v29 = vsel %vm165_vm3, %v560_v24, %v592_v26 }
 0x106   :  { %v250_v31 = vsel %vm208_vm4, %v565_v27, %v207_v29 }
 0x107   :  { %v253_v32 = vpack.c.bf16 %v250_v31, %v249_v30 }
 0x109   :  { %528 = vmatmul.mubr.bf16.gmra.mrb[8].mxu1 %v253_v32 }
 0x1cc   :  { %v359_v34 = vpop.f32.mrb[0].mxu1 }
 0x1cd   :  { %v521_v0 = vpop.f32.mrb[1].mxu1  ;;  %v360_v36 = vadd.f32 %v427_v33, %v359_v34 }
 0x1ce   :  { %v362_v35 = vpop.f32.mrb[2].mxu1 }
 0x1cf   :  { %v363_v37 = vadd.f32 %v427_v33, %v362_v35  ;;  %v522_v38 = vpop.f32.mrb[3].mxu1 }
 0x1d1   :  { %v451_v39 = vpack.c.bf16 %v363_v37, %v360_v36 }
 0x1d3   :  { %452 = vst [vmem:[%s779_s7] sm:$0xff] %v451_v39  }
 0x1d4   :  { %v367_v40 = vpop.f32.mrb[4].mxu1 }
 0x1d5   :  { %v525_v41 = vpop.f32.mrb[5].mxu1  ;;  %v368_v43 = vadd.f32 %v427_v33, %v367_v40 }
 0x1d6   :  { %v370_v42 = vpop.f32.mrb[6].mxu1 }
 0x1d7   :  { %v371_v44 = vadd.f32 %v427_v33, %v370_v42  ;;  %v526_v45 = vpop.f32.mrb[7].mxu1 }
 0x1d9   :  { %v456_v46 = vpack.c.bf16 %v371_v44, %v368_v43 }
 0x1db   :  { %463 = vst [vmem:[%s779_s7 + $0x8] sm:$0xff] %v456_v46  }
 0x1dc   :  { %v375_v47 = vpop.f32.mrb[8].mxu1 }
 0x1dd   :  { %v529_v48 = vpop.f32.mrb[9].mxu1  ;;  %v376_v50 = vadd.f32 %v427_v33, %v375_v47 }
 0x1de   :  { %v378_v49 = vpop.f32.mrb[10].mxu1 }
 0x1df   :  { %v379_v51 = vadd.f32 %v427_v33, %v378_v49  ;;  %v530_v52 = vpop.f32.mrb[11].mxu1 }
 0x1e1   :  { %v461_v53 = vpack.c.bf16 %v379_v51, %v376_v50 }
 0x1e3   :  { %464 = vst [vmem:[%s779_s7 + $0x10] sm:$0xff] %v461_v53  }

// kernel: portaspeech_forward.3
= control target key start
LH: loop header
LB: loop body
LE: loop exit
PB: predicated region body
PF: predicated region fallthrough
CT: control target
= control target key end

     0   :  { %s3429_s24 = smov 0   ;;  %s3431_s25 = smov 0   ;;  %s4099_s0 = inlined_call_operand.vmem [shape: bf16[2,96,128], index: 0, kind: input, shape index: {}]   ;;  %s4100_s1 = inlined_call_operand.vmem [shape: bf16[2,3,16,128], index: 1, kind: input, shape index: {}]   ;;  %s4101_s2 = inlined_call_operand.vmem [shape: bf16[128,128], index: 2, kind: input, shape index: {}]   ;;  %s4102_s3 = inlined_call_operand.vmem [shape: f32[2,1,128], index: 3, kind: input, shape index: {}]   ;;  %s4103_s4 = inlined_call_operand.vmem [shape: f32[1,128], index: 4, kind: input, shape index: {}]   ;;  %s4104_s5 = inlined_call_operand.vmem [shape: f32[1,128], index: 5, kind: input, shape index: {}]   ;;  %s4105_s6 = inlined_call_operand.vmem [shape: bf16[128,128], index: 6, kind: input, shape index: {}]   ;;  %s4106_s7 = inlined_call_operand.vmem [shape: f32[1,128], index: 7, kind: input, shape index: {}]   ;;  %s4107_s8 = inlined_call_operand.vmem [shape: bf16[128,128], index: 8, kind: input, shape index: {}]   ;;  %s4108_s9 = inlined_call_operand.vmem [shape: f32[2,1,128], index: 9, kind: input, shape index: {}]   ;;  %s4109_s10 = inlined_call_operand.vmem [shape: f32[1,128], index: 10, kind: input, shape index: {}]   ;;  %s4110_s11 = inlined_call_operand.vmem [shape: f32[1,128], index: 11, kind: input, shape index: {}]   ;;  %s4111_s12 = inlined_call_operand.vmem [shape: bf16[128,640], index: 12, kind: input, shape index: {}]   ;;  %s4112_s13 = inlined_call_operand.vmem [shape: bf16[128,640], index: 13, kind: input, shape index: {}]   ;;  %s4113_s14 = inlined_call_operand.vmem [shape: f32[1,128], index: 14, kind: input, shape index: {}]   ;;  %s4114_s15 = inlined_call_operand.vmem [shape: f32[2,96,128], index: 15, kind: output, shape index: {0}]   ;;  %s4115_s16 = inlined_call_operand.vmem [shape: f32[2,96,128], index: 16, kind: output, shape index: {1}]   ;;  %s4116_s17 = inlined_call_operand.vmem [shape: f32[2,96,128], index: 17, kind: output, shape index: {2}]  }
   0x1   :  { %4120 = sst [smem:[#allocation7_spill]] %s4099_s0  ;;  %s3433_s26 = smov 0  }
   0x2   :  { %4121 = sst [smem:[#allocation8_spill]] %s4100_s1  ;;  %s3435_s27 = smov 0  }
   0x3   :  { %4122 = sst [smem:[#allocation9_spill]] %s4110_s11  ;;  %s3437_s28 = smov 0  }
   0x4   :  { %4123 = sst [smem:[#allocation10_spill]] %s4113_s14 }
   0x5   :  { %4124 = sst [smem:[#allocation11_spill]] %s4115_s16 }
   0x6   :  { %4125 = sst [smem:[#allocation12_spill]] %s4116_s17 }
   0x7 LB: > { %4126 = sst [smem:[#allocation2_spill]] %s3325_s26  ;;  %s37_s29 = sadd.s32 1, %s3325_s26  ;;  %s3333_s28 = sphi %s3437_s28, %s28_s28   ;;  %s3329_s27 = sphi %s3435_s27, %s4145_s27   ;;  %s3325_s26 = sphi %s3433_s26, %s4144_s26   ;;  %s3321_s25 = sphi %s3431_s25, %s4143_s25   ;;  %s3317_s24 = sphi %s3429_s24, %s4142_s24  }
   0x8   : > { %4127 = sst [smem:[#allocation3_spill]] %s3329_s27  ;;  %s40_s0 = sadd.s32 1, %s3329_s27 }
   0x9   : > { %4128 = sst [smem:[#allocation4_spill]] %s3333_s28  ;;  %p38_p0 = scmp.ge.s32.totalorder %s37_s29, 3 }
   0xa   : > { %p2653_p1 = scmp.ge.s32.totalorder %s3333_s28, 1  ;;  %p549_p2 = scmp.lt.s32.totalorder %s3333_s28, 7 }
   0xb   : > { %s4147_s29 = smov (%p38_p0, %s37_s29), 0  ;;  %s4149_s0 = smov (!%p38_p0, %s40_s0), %s3329_s27 }
   0xc   : > { %4129 = sst [smem:[#allocation5_spill]] %s4147_s29  ;;  %p550_p3 = pnand %p2653_p1, %p549_p2 }
   0xd   : > { %p42_p4 = scmp.ge.s32.totalorder %s4149_s0, 2  ;;  %v3132_v0 = vld [vmem:[%s4101_s2] sm:$0xff] (!%p550_p3)   ;;  %s2654_s19 = sshll.u32 (!%p550_p3), %s3317_s24, 2  ;;  %v3133_v1 = vld [vmem:[%s4101_s2 + $0x8] sm:$0xff] (!%p550_p3)   ;;  %v3134_v2 = vld [vmem:[%s4101_s2 + $0x10] sm:$0xff] (!%p550_p3)   ;;  %v3335_v3 = vmov (!%p550_p3), 0.0  }
   0xe   : > { %553 = sbr.rel (%p550_p3) target bundleno = 1338 (0x53a), region = 80  ;;  %p643_p5 = scmp.lt.s32.totalorder (!%p550_p3), %s3321_s25, 1  ;;  %2902 = vmatprep.subr.bf16.mxu1 (!%p550_p3), %v3132_v0  ;;  %2942 = vmatprep.subr.bf16.mxu0 (!%p550_p3), %v3335_v3  ;;  %v3135_v4 = vld [vmem:[%s4101_s2 + $0x18] sm:$0xff] (!%p550_p3)   ;;  %vm3336_vm0 = vmmov (!%p550_p3), 0   ;;  %v3136_v6 = vld [vmem:[%s4101_s2 + $0x20] sm:$0xff] (!%p550_p3)   ;;  %v3137_v7 = vld [vmem:[%s4101_s2 + $0x28] sm:$0xff] (!%p550_p3)  }
   0xf   : > { %s4151_s0 = smov (%p42_p4, %s4149_s0), 0  ;;  %p645_p6 = scmp.lt.s32.totalorder (!%p550_p3), %s2654_s19, 11  ;;  %2903 = vmatpush3.bf16.msra.mxu1 (!%p550_p3), %v3132_v0  ;;  %2958 = vmatprep.mubr.msk.bf16.mxu0 (!%p550_p3), %vm3336_vm0, %v3335_v3  ;;  %v3138_v8 = vld [vmem:[%s4101_s2 + $0x30] sm:$0xff] (!%p550_p3)   ;;  %v3139_v9 = vld [vmem:[%s4101_s2 + $0x38] sm:$0xff] (!%p550_p3)   ;;  %v3143_v12 = vld [vmem:[%s4105_s6] sm:$0xff] (!%p550_p3)   ;;  %vm3337_vm2 = vmmov (!%p550_p3), 1  }
  0x10   : > { %4130 = sst [smem:[#allocation6_spill]] %s4151_s0  ;;  %2904 = vmatprep.subr.bf16.mxu1 (!%p550_p3), %v3133_v1  ;;  %s4131_s0 = sld [smem:[#allocation7_spill]] (!%p550_p3)  ;;  %2943 = vmatpush3.bf16.msra.mxu0 (!%p550_p3), %v3143_v12  ;;  %v3144_v31 = vld [vmem:[%s4105_s6 + $0x8] sm:$0xff] (!%p550_p3)   ;;  %v3145_v34 = vld [vmem:[%s4105_s6 + $0x10] sm:$0xff] (!%p550_p3)   ;;  %v3146_v36 = vld [vmem:[%s4105_s6 + $0x18] sm:$0xff] (!%p550_p3)   ;;  %vm2323_vm6 = vcmask (!%p550_p3), 1046528  }
  0x11   : > { %p654_p7 = scmp.lt.s32.totalorder (!%p550_p3), %s3317_s24, 2  ;;  %s4132_s22 = sld [smem:[#allocation8_spill]] (!%p550_p3)  ;;  %2944 = vmatprep.subr.bf16.mxu0 (!%p550_p3), %v3335_v3  ;;  %v3147_v37 = vld [vmem:[%s4105_s6 + $0x20] sm:$0xff] (!%p550_p3)   ;;  %v3148_v38 = vld [vmem:[%s4105_s6 + $0x28] sm:$0xff] (!%p550_p3)   ;;  %v3149_v39 = vld [vmem:[%s4105_s6 + $0x30] sm:$0xff] (!%p550_p3)   ;;  %vm2347_vm7 = vcmask (!%p550_p3), 1045504  }
  0x12   : > { %v3150_v40 = vld [vmem:[%s4105_s6 + $0x38] sm:$0xff] (!%p550_p3)   ;;  %v3183_v42 = vld [vmem:[%s4107_s8] sm:$0xff] (!%p550_p3)   ;;  %v3184_v43 = vld [vmem:[%s4107_s8 + $0x8] sm:$0xff] (!%p550_p3)   ;;  %p1000_p8 = scmp.eq.s32.totalorder (!%p550_p3), %s3317_s24, 0  ;;  %p1016_p9 = scmp.eq.s32.totalorder (!%p550_p3), %s3317_s24, 2  ;;  %vm2370_vm8 = vcmask (!%p550_p3), 1044480  }
  0x13   : > { %2905 = vmatpush3.bf16.msra.mxu1 (!%p550_p3), %v3133_v1  ;;  %v3153_v41 = vld [vmem:[%s4112_s13 + $0x4] ss:$20 sps:$4 sm:$0xff] (!%p550_p3)   ;;  %v3185_v44 = vld [vmem:[%s4107_s8 + $0x10] sm:$0xff] (!%p550_p3)   ;;  %v3188_v50 = vld [vmem:[%s4107_s8 + $0x28] sm:$0xff] (!%p550_p3)   ;;  %s4137_s1 = sld [smem:[#allocation9_spill]] (!%p550_p3)  ;;  %s4138_s21 = sld [smem:[#allocation11_spill]] (!%p550_p3) }
  0x14   : > { %2906 = vmatprep.subr.bf16.mxu1 (!%p550_p3), %v3134_v2  ;;  %2945 = vmatpush3.bf16.msra.mxu0 (!%p550_p3), %v3144_v31  ;;  %v3186_v45 = vld [vmem:[%s4107_s8 + $0x18] sm:$0xff] (!%p550_p3)   ;;  %v3187_v46 = vld [vmem:[%s4107_s8 + $0x20] sm:$0xff] (!%p550_p3)   ;;  %v3189_v57 = vld [vmem:[%s4107_s8 + $0x30] sm:$0xff] (!%p550_p3)   ;;  %s4139_s29 = sld [smem:[#allocation10_spill]] (!%p550_p3)  ;;  %s4140_s11 = sld [smem:[#allocation12_spill]] (!%p550_p3)  ;;  %vm2395_vm9 = vcmask (!%p550_p3), 1043456  }
  0x15   : > { %s4153_s25 = smov (!%p643_p5, %s3321_s25), 1  ;;  %s4155_s19 = smov (!%p645_p6, %s2654_s19), 11  ;;  %2946 = vmatprep.subr.bf16.mxu0 %v3335_v3 }
  0x16   : > { %s3086_s23 = smul.u32 12, %s4153_s25  ;;  %s663_s26 = scalar_lea.vmem %s4102_s3, %s4153_s25 }
  0x17   : > { %2907 = vmatpush3.bf16.msra.mxu1 %v3134_v2  ;;  %s3087_s27 = smul.u32 6, %s4153_s25  ;;  %v2675_v17 = vld [vmem:[%s663_s26] ss:$0 sm:$0xff] }
  0x18   : > { %s3474_s30 = sadd.s32 %s3086_s23, %s4155_s19  ;;  %2908 = vmatprep.subr.bf16.mxu1 %v3135_v4  ;;  %2947 = vmatpush3.bf16.msra.mxu0 %v3145_v34 }
  0x19   : > { %s2655_s20 = sshll.u32 %s3474_s30, 2  ;;  %2948 = vmatprep.subr.bf16.mxu0 %v3335_v3 }
  0x1a   : > { %s650_s19 = scalar_lea.vmem %s4131_s0, %s2655_s20 }
  0x1b   : > { %v3140_v5 = vld [vmem:[%s650_s19] sm:$0xff]   ;;  %s655_s18 = scalar_select %p654_p7, %s3317_s24, 2  ;;  %2909 = vmatpush3.bf16.msra.mxu1 %v3135_v4  ;;  %v3141_v10 = vld [vmem:[%s650_s19 + $0x8] sm:$0xff]  }
  0x1c   : > { %2918 = vmatprep.mubr.bf16.mxu1 %v3140_v5  ;;  %2910 = vmatprep.subr.bf16.mxu1 %v3136_v6  ;;  %s1023_s24 = scalar_select %p1016_p9, 1, 0 }
  0x1d   : > { %s2656_s28 = sshll.u32 %s655_s18, 1  ;;  %2949 = vmatpush3.bf16.msra.mxu0 %v3146_v36  ;;  %s3767_s18 = sshll.u32 %s3474_s30, 3 }
  0x1e   : > { %s658_s17 = sadd.s32 %s3087_s27, %s2656_s28  ;;  %2950 = vmatprep.subr.bf16.mxu0 %v3335_v3  ;;  %s3993_s30 = scalar_lea.vmem %s4138_s21, %s3767_s18 }
  0x1f   : > { %s2657_s0 = sshll.u32 %s658_s17, 2  ;;  %2911 = vmatpush3.bf16.msra.mxu1 %v3136_v6  ;;  %s666_s17 = scalar_lea.vmem %s4108_s9, %s4153_s25 }
  0x20   : > { %s660_s14 = scalar_lea.vmem %s4132_s22, %s2657_s0  ;;  %2912 = vmatprep.subr.bf16.mxu1 %v3137_v7  ;;  %s3776_s22 = scalar_lea.vmem %s4114_s15, %s3767_s18 }
  0x21   : > { %v3142_v11 = vld [vmem:[%s660_s14] sm:$0xff]   ;;  %2951 = vmatpush3.bf16.msra.mxu0 %v3147_v37  ;;  %s1007_s14 = scalar_select %p1000_p8, 1, 0 }
  0x22   : > { %2952 = vmatprep.subr.bf16.mxu0 %v3335_v3  ;;  %s695_s16 = scalar_lea.vmem %s4140_s11, %s3767_s18 }
  0x23   : > { %2913 = vmatpush3.bf16.msra.mxu1 %v3137_v7  ;;  %v1008_v36 = vstv %s1007_s14 }
  0x24   : > { %2914 = vmatprep.subr.bf16.mxu1 %v3138_v8  ;;  %vm2837_vm1 = vcmp.ne.s32.totalorder %v1008_v36, 1 }
  0x25   : > { %2953 = vmatpush3.bf16.msra.mxu0 %v3148_v38  ;;  %vm3631_vm3 = vmpackc.low %vm3337_vm2, %vm2837_vm1 }
  0x26   : > { %2954 = vmatprep.subr.bf16.mxu0 %v3335_v3 }
  0x27   : > { %2915 = vmatpush3.bf16.msra.mxu1 %v3138_v8 }
  0x28   : > { %2916 = vmatprep.subr.bf16.mxu1 %v3139_v9 }
  0x29   : > { %2955 = vmatpush3.bf16.msra.mxu0 %v3149_v39 }
  0x2a   : > { %2956 = vmatprep.subr.bf16.mxu0 %v3335_v3 }
  0x2b   : > { %2917 = vmatpush3.bf16.msra.mxu1 %v3139_v9 }
  0x2c   : > { %2922 = vmatprep.subr.bf16.mxu1 %v3335_v3 }
  0x2d   : > { %2957 = vmatpush3.bf16.msra.mxu0 %v3150_v40 }
  0x2e   : > { %2919 = vmatmul.mubr.bf16.vlgmr.msra.gmra.mrb[0].mxu1 %v3141_v10  ;;  %1743 = vmatprep.subr.bf16.mxu0 %v3153_v41  ;;  %v2677_v41 = vld [vmem:[%s4104_s5] ss:$0 sm:$0xff] }
  0x2f   : > { %2923 = vmatpush3.bf16.msra.mxu1 %v3132_v0  ;;  %2938 = vmatprep.mubr.msk.bf16.mxu1 %vm3336_vm0, %v3335_v3 }
  0x30   : > { %2924 = vmatprep.subr.bf16.mxu1 %v3335_v3 }
  0x33   : > { %2925 = vmatpush3.bf16.msra.mxu1 %v3133_v1 }
  0x34   : > { %2926 = vmatprep.subr.bf16.mxu1 %v3335_v3 }
  0x37   : > { %2927 = vmatpush3.bf16.msra.mxu1 %v3134_v2 }
  0x38   : > { %2928 = vmatprep.subr.bf16.mxu1 %v3335_v3 }
  0x3b   : > { %2929 = vmatpush3.bf16.msra.mxu1 %v3135_v4 }
  0x3c   : > { %2930 = vmatprep.subr.bf16.mxu1 %v3335_v3 }
  0x3f   : > { %2931 = vmatpush3.bf16.msra.mxu1 %v3136_v6 }
  0x40   : > { %2932 = vmatprep.subr.bf16.mxu1 %v3335_v3 }
  0x43   : > { %2933 = vmatpush3.bf16.msra.mxu1 %v3137_v7 }
  0x44   : > { %2934 = vmatprep.subr.bf16.mxu1 %v3335_v3 }
  0x47   : > { %2935 = vmatpush3.bf16.msra.mxu1 %v3138_v8 }
  0x48   : > { %2936 = vmatprep.subr.bf16.mxu1 %v3335_v3 }
  0x4b   : > { %2937 = vmatpush3.bf16.msra.mxu1 %v3139_v9 }
  0x4c   : > { %2970 = vmatprep.subr.bf16.mxu1 %v3335_v3 }
  0x4e   : > { %2939 = vmatmul.mubr.bf16.vlgmr.msra.gmra.mrb[4].mxu1 %v3142_v11 }
  0x4f   : > { %2986 = vmatprep.mubr.msk.bf16.mxu1 %vm3336_vm0, %v3335_v3  ;;  %2971 = vmatpush3.bf16.msra.mxu1 %v3183_v42 }
  0x50   : > { %2972 = vmatprep.subr.bf16.mxu1 %v3335_v3 }
  0x53   : > { %2973 = vmatpush3.bf16.msra.mxu1 %v3184_v43 }
  0x54   : > { %2974 = vmatprep.subr.bf16.mxu1 %v3335_v3 }
  0x57   : > { %2975 = vmatpush3.bf16.msra.mxu1 %v3185_v44 }
  0x58   : > { %2976 = vmatprep.subr.bf16.mxu1 %v3335_v3 }
  0x5b   : > { %2977 = vmatpush3.bf16.msra.mxu1 %v3186_v45 }
  0x5c   : > { %2978 = vmatprep.subr.bf16.mxu1 %v3335_v3 }
  0x5f   : > { %2979 = vmatpush3.bf16.msra.mxu1 %v3187_v46 }
  0x60   : > { %2980 = vmatprep.subr.bf16.mxu1 %v3335_v3 }
  0x63   : > { %2981 = vmatpush3.bf16.msra.mxu1 %v3188_v50 }
  0x64   : > { %2982 = vmatprep.subr.bf16.mxu1 %v3335_v3 }
  0x67   : > { %2983 = vmatpush3.bf16.msra.mxu1 %v3189_v57 }
  0x68   : > { %2984 = vmatprep.subr.bf16.mxu1 %v3335_v3 }
 0x101   : > { %v2920_v13 = vpop.f32.mrb[0].mxu1 }
 0x102   : > { %v812_v14 = vpop.f32.mrb[1].mxu1  ;;  %v3537_v27 = vadd.f32 %v2920_v13, %v2675_v17 }
 0x103   : > { %v2921_v15 = vpop.f32.mrb[2].mxu1  ;;  %v3527_v22 = vadd.f32 %v2675_v17, %v812_v14 }
 0x104   : > { %v815_v16 = vpop.f32.mrb[3].mxu1  ;;  %v912_v29 = vmul.f32 %v3537_v27, %v3537_v27  ;;  %v3545_v30 = vadd.f32 %v2921_v15, %v2675_v17 }
 0x105   : > { %v910_v25 = vmul.f32 %v3527_v22, %v3527_v22  ;;  %v3535_v26 = vadd.f32 %v2675_v17, %v815_v16 }
 0x106   : > { %v913_v33 = vmul.f32 %v3545_v30, %v3545_v30 }
 0x107   : > { %v911_v28 = vmul.f32 %v3535_v26, %v3535_v26 }
 0x121   : > { %v869_v18 = vpop.f32.mrb[4].mxu1 }
 0x122   : > { %v3525_v19 = vadd.f32 %v2675_v17, %v869_v18  ;;  %v2940_v20 = vpop.f32.mrb[5].mxu1 }
 0x123   : > { %v872_v21 = vpop.f32.mrb[6].mxu1 }
 0x124   : > { %891 = vadd.xlane.f32.xlu0 %v3525_v19  ;;  %v2941_v23 = vpop.f32.mrb[7].mxu1  ;;  %v909_v24 = vmul.f32 %v3525_v19, %v3525_v19  ;;  %v3550_v32 = vadd.f32 %v2675_v17, %v872_v21 }
 0x126   : > { %915 = vadd.xlane.f32.xlu1 %v909_v24  ;;  %v914_v35 = vmul.f32 %v3550_v32, %v3550_v32 }
 0x128   : > { %893 = vadd.xlane.f32.xlu0 %v3527_v22 }
 0x12a   : > { %917 = vadd.xlane.f32.xlu1 %v910_v25 }
 0x12c   : > { %895 = vadd.xlane.f32.xlu0 %v3535_v26 }
 0x12e   : > { %897 = vadd.xlane.f32.xlu1 %v3537_v27 }
 0x130   : > { %919 = vadd.xlane.f32.xlu0 %v911_v28  ;;  %v2676_v28 = vld [vmem:[%s4103_s4] ss:$0 sm:$0xff] }
 0x132   : > { %921 = vadd.xlane.f32.xlu1 %v912_v29 }
 0x134   : > { %899 = vadd.xlane.f32.xlu0 %v3545_v30 }
 0x136   : > { %901 = vadd.xlane.f32.xlu1 %v3550_v32 }
 0x138   : > { %923 = vadd.xlane.f32.xlu0 %v913_v33 }
 0x13a   : > { %925 = vadd.xlane.f32.xlu1 %v914_v35 }
 0x1b1   : > { %v892_v47 = vpop.xlane.xlu0 %891 }
 0x1b2   : > { %v903_v48 = vmul.f32 0.015625, %v892_v47  ;;  %v3151_v47 = vld [vmem:[%s4112_s13] ss:$20 sps:$4 sm:$0xff]  }
 0x1b3   : > { %v916_v49 = vpop.xlane.xlu1 %915 }
 0x1b4   : > { %v933_v51 = vmul.f32 %v903_v48, %v903_v48  ;;  %v927_v52 = vmul.f32 0.015625, %v916_v49  ;;  %v945_v15 = vsub.f32 %v3525_v19, %v903_v48 }
 0x1b5   : > { %v894_v53 = vpop.xlane.xlu0 %893 }
 0x1b6   : > { %v939_v54 = vsub.f32 %v927_v52, %v933_v51  ;;  %v904_v55 = vmul.f32 0.015625, %v894_v53 }
 0x1b7   : > { %v918_v56 = vpop.xlane.xlu1 %917 }
 0x1b8   : > { %v951_v58 = vadd.f32 1e-05, %v939_v54  ;;  %v934_v59 = vmul.f32 %v904_v55, %v904_v55  ;;  %v928_v60 = vmul.f32 0.015625, %v918_v56  ;;  %v946_v29 = vsub.f32 %v3527_v22, %v904_v55  ;;  %v3159_v55 = vld [vmem:[%s4112_s13 + $0x54] ss:$20 sps:$4 sm:$0xff]  }
 0x1b9   : > { %v896_v61 = vpop.xlane.xlu0 %895 }
 0x1ba   : > { %3271 = vrsqrt.f32 %v951_v58  ;;  %v940_v62 = vsub.f32 %v928_v60, %v934_v59  ;;  %v905_v63 = vmul.f32 0.015625, %v896_v61  ;;  %v3157_v61 = vld [vmem:[%s4112_s13 + $0x50] ss:$20 sps:$4 sm:$0xff]  }
 0x1bb   : > { %v898_v0 = vpop.xlane.xlu1 %897 }
 0x1bc   : > { %v952_v1 = vadd.f32 1e-05, %v940_v62  ;;  %v906_v2 = vmul.f32 0.015625, %v898_v0  ;;  %v935_v5 = vmul.f32 %v905_v63, %v905_v63  ;;  %v947_v22 = vsub.f32 %v3535_v26, %v905_v63  ;;  %v3156_v26 = vld [vmem:[%s4112_s13 + $0x2c] ss:$20 sps:$4 sm:$0xff]  }
 0x1bd   : > { %v920_v4 = vpop.xlane.xlu0 %919  ;;  %v3162_v0 = vld [vmem:[%s4112_s13 + $0x7c] ss:$20 sps:$4 sm:$0xff]  }
 0x1be   : > { %3273 = vrsqrt.f32 %v952_v1  ;;  %v929_v6 = vmul.f32 0.015625, %v920_v4  ;;  %v936_v8 = vmul.f32 %v906_v2, %v906_v2  ;;  %v948_v49 = vsub.f32 %v3537_v27, %v906_v2  ;;  %v3154_v27 = vld [vmem:[%s4112_s13 + $0x28] ss:$20 sps:$4 sm:$0xff]  }
 0x1bf   : > { %v922_v7 = vpop.xlane.xlu1 %921 }
 0x1c0   : > { %v941_v9 = vsub.f32 %v929_v6, %v935_v5  ;;  %v930_v10 = vmul.f32 0.015625, %v922_v7  ;;  %v3160_v6 = vld [vmem:[%s4112_s13 + $0x78] ss:$20 sps:$4 sm:$0xff]  }
 0x1c1   : > { %v900_v11 = vpop.xlane.xlu0 %899 }
 0x1c2   : > { %v953_v12 = vadd.f32 1e-05, %v941_v9  ;;  %v942_v13 = vsub.f32 %v930_v10, %v936_v8  ;;  %v3614_v14 = vmul.f32 0.015625, %v900_v11  ;;  %v3163_v10 = vld [vmem:[%s4112_s13 + $0xa0] ss:$20 sps:$4 sm:$0xff]  }
 0x1c3   : > { %v902_v16 = vpop.xlane.xlu1 %901 }
 0x1c4   : > { %v3272_v17 = vpop.eup %3271  ;;  %3275 = vrsqrt.f32 %v953_v12  ;;  %v954_v18 = vadd.f32 1e-05, %v942_v13  ;;  %v908_v20 = vmul.f32 0.015625, %v902_v16  ;;  %v937_v24 = vmul.f32 %v3614_v14, %v3614_v14  ;;  %v3168_v13 = vld [vmem:[%s4112_s13 + $0xcc] ss:$20 sps:$4 sm:$0xff]  }
 0x1c5   : > { %v924_v21 = vpop.xlane.xlu0 %923  ;;  %v963_v23 = vmul.f32 %v3272_v17, %v945_v15  ;;  %v949_v57 = vsub.f32 %v3545_v30, %v3614_v14  ;;  %v1024_v30 = vstv %s1023_s24  ;;  %v3166_v14 = vld [vmem:[%s4112_s13 + $0xc8] ss:$20 sps:$4 sm:$0xff]   ;;  %v3338_v15 = vmov 0   ;;  %v3169_v17 = vld [vmem:[%s4112_s13 + $0xf0] ss:$20 sps:$4 sm:$0xff]  }
 0x1c6   : > { %3277 = vrsqrt.f32 %v954_v18  ;;  %v931_v25 = vmul.f32 0.015625, %v924_v21  ;;  %v938_v33 = vmul.f32 %v908_v20, %v908_v20  ;;  %v950_v62 = vsub.f32 %v3550_v32, %v908_v20  ;;  %v3165_v32 = vld [vmem:[%s4112_s13 + $0xa4] ss:$20 sps:$4 sm:$0xff]   ;;  %v3171_v16 = vld [vmem:[%s4112_s13 + $0xf4] ss:$20 sps:$4 sm:$0xff]  }
 0x1c7   : > { %v926_v19 = vpop.xlane.xlu1 %925  ;;  %v975_v38 = vmul.f32 %v2676_v28, %v963_v23  ;;  %vm2838_vm4 = vcmp.ne.s32.totalorder %v1024_v30, 1  ;;  %v3174_v18 = vld [vmem:[%s4112_s13 + $0x11c] ss:$20 sps:$4 sm:$0xff]   ;;  %v3172_v20 = vld [vmem:[%s4112_s13 + $0x118] ss:$20 sps:$4 sm:$0xff]  }
 0x1c8   : > { %v3274_v31 = vpop.eup %3273  ;;  %v943_v34 = vsub.f32 %v931_v25, %v937_v24  ;;  %v932_v35 = vmul.f32 0.015625, %v926_v19  ;;  %vm3677_vm5 = vmpackc.low %vm2838_vm4, %vm3337_vm2  ;;  %v3175_v21 = vld [vmem:[%s4112_s13 + $0x10] ss:$20 sps:$4 sm:$0xff]   ;;  %v3176_v23 = vld [vmem:[%s4112_s13 + $0x38] ss:$20 sps:$4 sm:$0xff]  }
 0x1c9   : > { %v964_v37 = vmul.f32 %v3274_v31, %v946_v29  ;;  %v987_v44 = vadd.f32 %v2677_v41, %v975_v38  ;;  %v3177_v24 = vld [vmem:[%s4112_s13 + $0x60] ss:$20 sps:$4 sm:$0xff]   ;;  %v3178_v25 = vld [vmem:[%s4112_s13 + $0x88] ss:$20 sps:$4 sm:$0xff]   ;;  %v3180_v29 = vld [vmem:[%s4112_s13 + $0xd8] ss:$20 sps:$4 sm:$0xff]  }
 0x1ca   : > { %v955_v39 = vadd.f32 1e-05, %v943_v34  ;;  %v944_v40 = vsub.f32 %v932_v35, %v938_v33  ;;  %v3181_v19 = vld [vmem:[%s4112_s13 + $0x100] ss:$20 sps:$4 sm:$0xff]   ;;  %v3182_v31 = vld [vmem:[%s4112_s13 + $0x128] ss:$20 sps:$4 sm:$0xff]  }
 0x1cb   : > { %v976_v42 = vmul.f32 %v2676_v28, %v964_v37  ;;  %v3190_v33 = vld [vmem:[%s4107_s8 + $0x38] sm:$0xff]   ;;  %v3193_v34 = vld [vmem:[%s4112_s13 + $0xc] ss:$20 sps:$4 sm:$0xff]   ;;  %v3206_v30 = vld [vmem:[%s4112_s13 + $0xd0] ss:$20 sps:$4 sm:$0xff]  }
 0x1cc   : > { %3279 = vrsqrt.f32 %v955_v39  ;;  %v956_v43 = vadd.f32 1e-05, %v944_v40  ;;  %2985 = vmatpush3.bf16.msra.mxu1 %v3190_v33  ;;  %v2678_v35 = vld [vmem:[%s4106_s7] ss:$0 sm:$0xff] }
 0x1cd   : > { %v988_v45 = vadd.f32 %v2677_v41, %v976_v42  ;;  %1804 = vmatprep.subr.bf16.mxu1 %v3193_v34  ;;  %v3191_v42 = vld [vmem:[%s4112_s13 + $0x8] ss:$20 sps:$4 sm:$0xff]  }
 0x1ce   : > { %v3276_v46 = vpop.eup %3275  ;;  %3281 = vrsqrt.f32 %v956_v43 }
 0x1cf   : > { %v3636_v50 = vpack.c.bf16 %v988_v45, %v987_v44  ;;  %v965_v51 = vmul.f32 %v3276_v46, %v947_v22  ;;  %v3196_v22 = vld [vmem:[%s4112_s13 + $0x34] ss:$20 sps:$4 sm:$0xff]   ;;  %v3194_v45 = vld [vmem:[%s4112_s13 + $0x30] ss:$20 sps:$4 sm:$0xff]  }
 0x1d0   : > { %v3278_v52 = vpop.eup %3277 }
 0x1d1   : > { %2959 = vmatmul.mubr.msk.bf16.vlgmr.msra.gmra.mrb[0].mxu0 %vm3631_vm3, %v3636_v50  ;;  %v966_v53 = vmul.f32 %v3278_v52, %v948_v49  ;;  %v977_v54 = vmul.f32 %v2676_v28, %v965_v51  ;;  %v3199_v49 = vld [vmem:[%s4112_s13 + $0x5c] ss:$20 sps:$4 sm:$0xff]  }
 0x1d2   : > { %1744 = vmatpush1.bf16.msra.mxu0 %v3151_v47  ;;  %2962 = vmatprep.mubr.msk.bf16.mxu0 %vm3336_vm0, %v3335_v3 }
 0x1d3   : > { %1745 = vmatprep.subr.bf16.mxu0 %v3156_v26  ;;  %v978_v56 = vmul.f32 %v2676_v28, %v966_v53  ;;  %v989_v58 = vadd.f32 %v2677_v41, %v977_v54  ;;  %v3197_v53 = vld [vmem:[%s4112_s13 + $0x58] ss:$20 sps:$4 sm:$0xff]  }
 0x1d5   : > { %v990_v59 = vadd.f32 %v2677_v41, %v978_v56  ;;  %v3200_v56 = vld [vmem:[%s4112_s13 + $0x80] ss:$20 sps:$4 sm:$0xff]  }
 0x1d6   : > { %v3280_v60 = vpop.eup %3279  ;;  %1746 = vmatpush1.bf16.msra.mxu0 %v3154_v27  ;;  %v3202_v27 = vld [vmem:[%s4112_s13 + $0x84] ss:$20 sps:$4 sm:$0xff]  }
 0x1d7   : > { %1747 = vmatprep.subr.bf16.mxu0 %v3159_v55  ;;  %v3659_v63 = vpack.c.bf16 %v990_v59, %v989_v58  ;;  %v967_v1 = vmul.f32 %v3280_v60, %v949_v57  ;;  %v3205_v59 = vld [vmem:[%s4112_s13 + $0xac] ss:$20 sps:$4 sm:$0xff]  }
 0x1d8   : > { %v3282_v2 = vpop.eup %3281 }
 0x1d9   : > { %2963 = vmatmul.mubr.bf16.gmra.mrb[4].mxu0 %v3659_v63  ;;  %v968_v4 = vmul.f32 %v3282_v2, %v950_v62  ;;  %v979_v5 = vmul.f32 %v2676_v28, %v967_v1  ;;  %v3208_v2 = vld [vmem:[%s4112_s13 + $0xd4] ss:$20 sps:$4 sm:$0xff]  }
 0x1da   : > { %1748 = vmatpush1.bf16.msra.mxu0 %v3157_v61  ;;  %2966 = vmatprep.mubr.msk.bf16.mxu0 %vm3336_vm0, %v3335_v3 }
 0x1db   : > { %1749 = vmatprep.subr.bf16.mxu0 %v3162_v0  ;;  %v980_v7 = vmul.f32 %v2676_v28, %v968_v4  ;;  %v991_v8 = vadd.f32 %v2677_v41, %v979_v5  ;;  %v3179_v28 = vld [vmem:[%s4112_s13 + $0xb0] ss:$20 sps:$4 sm:$0xff]   ;;  %v3203_v0 = vld [vmem:[%s4112_s13 + $0xa8] ss:$20 sps:$4 sm:$0xff]   ;;  %v3209_v5 = vld [vmem:[%s4112_s13 + $0xf8] ss:$20 sps:$4 sm:$0xff]  }
 0x1dc   : > { %v3211_v4 = vld [vmem:[%s4112_s13 + $0xfc] ss:$20 sps:$4 sm:$0xff]  }
 0x1dd   : > { %v992_v9 = vadd.f32 %v2677_v41, %v980_v7 }
 0x1de   : > { %1750 = vmatpush1.bf16.msra.mxu0 %v3160_v6  ;;  %v3214_v6 = vld [vmem:[%s4112_s13 + $0x124] ss:$20 sps:$4 sm:$0xff]  }
 0x1df   : > { %1751 = vmatprep.subr.bf16.mxu0 %v3165_v32  ;;  %v3681_v12 = vpack.c.bf16 %v992_v9, %v991_v8  ;;  %v3212_v32 = vld [vmem:[%s4112_s13 + $0x120] ss:$20 sps:$4 sm:$0xff]  }
 0x1e1   : > { %2967 = vmatmul.mubr.msk.bf16.gmra.mrb[8].mxu0 %vm3677_vm5, %v3681_v12 }
 0x1e2   : > { %1752 = vmatpush1.bf16.msra.mxu0 %v3163_v10  ;;  %1775 = vmatprep.mubr.bf16.mxu0 %v3338_v15 }
 0x1e3   : > { %1753 = vmatprep.subr.bf16.mxu0 %v3168_v13  ;;  %v3218_v13 = vld [vmem:[%s4111_s12 + $0x8] ss:$20 sps:$4 sm:$0xff]  }
 0x1e6   : > { %1754 = vmatpush1.bf16.msra.mxu0 %v3166_v14  ;;  %v3220_v14 = vld [vmem:[%s4111_s12 + $0xc] ss:$20 sps:$4 sm:$0xff]  }
 0x1e7   : > { %1755 = vmatprep.subr.bf16.mxu0 %v3171_v16 }
 0x1ea   : > { %1756 = vmatpush1.bf16.msra.mxu0 %v3169_v17 }
 0x1eb   : > { %1757 = vmatprep.subr.bf16.mxu0 %v3174_v18 }
 0x1ee   : > { %1758 = vmatpush1.bf16.msra.mxu0 %v3172_v20 }
 0x1ef   : > { %2998 = vmatprep.subr.bf16.mxu0 %v3335_v3 }
 0x1f1   : > { %2749 = vmatmul.mubr.msk.bf16.vlgmr.msra.gmra.mrb[12].mxu0 %vm3631_vm3, %v3636_v50 }
 0x1f2   : > { %2999 = vmatpush3.bf16.msra.mxu0 %v3175_v21  ;;  %1785 = vmatprep.mubr.bf16.mxu0 %v3338_v15 }
 0x1f3   : > { %3000 = vmatprep.subr.bf16.mxu0 %v3335_v3 }
 0x1f6   : > { %3001 = vmatpush3.bf16.msra.mxu0 %v3176_v23 }
 0x1f7   : > { %3002 = vmatprep.subr.bf16.mxu0 %v3335_v3 }
 0x1f9   : > { %1786 = vmatmul.mubr.bf16.gmra.mrb[16].mxu0 %v3659_v63 }
 0x1fa   : > { %3003 = vmatpush3.bf16.msra.mxu0 %v3177_v24  ;;  %1795 = vmatprep.mubr.bf16.mxu0 %v3338_v15 }
 0x1fb   : > { %3004 = vmatprep.subr.bf16.mxu0 %v3335_v3 }
 0x1fe   : > { %3005 = vmatpush3.bf16.msra.mxu0 %v3178_v25 }
 0x1ff   : > { %3006 = vmatprep.subr.bf16.mxu0 %v3335_v3 }
 0x201   : > { %2753 = vmatmul.mubr.msk.bf16.gmra.mrb[20].mxu0 %vm3677_vm5, %v3681_v12 }
 0x202   : > { %3007 = vmatpush3.bf16.msra.mxu0 %v3179_v28  ;;  %3014 = vmatprep.mubr.msk.bf16.mxu0 %vm3336_vm0, %v3335_v3 }
 0x203   : > { %3008 = vmatprep.subr.bf16.mxu0 %v3335_v3 }
 0x206   : > { %3009 = vmatpush3.bf16.msra.mxu0 %v3180_v29 }
 0x207   : > { %3010 = vmatprep.subr.bf16.mxu0 %v3335_v3 }
 0x20a   : > { %3011 = vmatpush3.bf16.msra.mxu0 %v3181_v19 }
 0x20b   : > { %3012 = vmatprep.subr.bf16.mxu0 %v3335_v3 }
 0x20e   : > { %3013 = vmatpush3.bf16.msra.mxu0 %v3182_v31 }
 0x211   : > { %3015 = vmatmul.mubr.msk.bf16.vlgmr.msra.gmra.mrb[24].mxu0 %vm3631_vm3, %v3636_v50 }
 0x212   : > { %3018 = vmatprep.mubr.msk.bf16.mxu0 %vm3336_vm0, %v3335_v3 }
 0x219   : > { %3019 = vmatmul.mubr.bf16.gmra.mrb[28].mxu0 %v3659_v63 }
 0x21a   : > { %3022 = vmatprep.mubr.msk.bf16.mxu0 %vm3336_vm0, %v3335_v3 }
 0x221   : > { %3023 = vmatmul.mubr.msk.bf16.gmra.mrb[32].mxu0 %vm3677_vm5, %v3681_v12 }
 0x222   : > { %2160 = vmatprep.mubr.bf16.mxu0 %v3338_v15 }
 0x2a4   : > { %v1164_v36 = vpop.f32.mrb[0].mxu0 }
 0x2a5   : > { %v2960_v37 = vpop.f32.mrb[1].mxu0  ;;  %v1165_v39 = vadd.f32 %v2678_v35, %v1164_v36 }
 0x2a6   : > { %v1167_v38 = vpop.f32.mrb[2].mxu0 }
 0x2a7   : > { %v1168_v40 = vadd.f32 %v2678_v35, %v1167_v38  ;;  %v2961_v41 = vpop.f32.mrb[3].mxu0 }
 0x2a8   : > { %v3223_v41 = vld [vmem:[%s4111_s12 + $0x2c] ss:$20 sps:$4 sm:$0xff]  }
 0x2a9   : > { %1187 = vst [vmem:[%s3776_s22] sm:$0xff] %v1168_v40  ;;  %v1191_v43 = vpack.c.bf16 %v1168_v40, %v1165_v39 }
 0x2ab   : > { %2987 = vmatmul.mubr.bf16.vlgmr.msra.gmra.mrb[8].mxu1 %v1191_v43 }
 0x2ac   : > { %1805 = vmatpush1.bf16.msra.mxu1 %v3191_v42  ;;  %v1172_v44 = vpop.f32.mrb[4].mxu0  ;;  %2990 = vmatprep.mubr.msk.bf16.mxu1 %vm3336_vm0, %v3335_v3 }
 0x2ad   : > { %v1173_v46 = vadd.f32 %v2678_v35, %v1172_v44  ;;  %v2964_v47 = vpop.f32.mrb[5].mxu0  ;;  %1806 = vmatprep.subr.bf16.mxu1 %v3196_v22  ;;  %v3221_v22 = vld [vmem:[%s4111_s12 + $0x28] ss:$20 sps:$4 sm:$0xff]  }
 0x2ae   : > { %v1175_v26 = vpop.f32.mrb[6].mxu0  ;;  %v3226_v44 = vld [vmem:[%s4111_s12 + $0x34] ss:$20 sps:$4 sm:$0xff]  }
 0x2af   : > { %1188 = vst [vmem:[%s3776_s22 + $0x8] sm:$0xff] %v1173_v46  ;;  %v1176_v51 = vadd.f32 %v2678_v35, %v1175_v26  ;;  %v2965_v52 = vpop.f32.mrb[7].mxu0  ;;  %v3229_v47 = vld [vmem:[%s4111_s12 + $0x54] ss:$20 sps:$4 sm:$0xff]   ;;  %v3227_v26 = vld [vmem:[%s4111_s12 + $0x50] ss:$20 sps:$4 sm:$0xff]  }
 0x2b0   : > { %1807 = vmatpush1.bf16.msra.mxu1 %v3194_v45  ;;  %v3224_v45 = vld [vmem:[%s4111_s12 + $0x30] ss:$20 sps:$4 sm:$0xff]   ;;  %v3230_v52 = vld [vmem:[%s4111_s12 + $0x58] ss:$20 sps:$4 sm:$0xff]  }
 0x2b1   : > { %1189 = vst [vmem:[%s3776_s22 + $0x10] sm:$0xff] %v1176_v51  ;;  %v1192_v54 = vpack.c.bf16 %v1176_v51, %v1173_v46  ;;  %1808 = vmatprep.subr.bf16.mxu1 %v3199_v49  ;;  %v3232_v51 = vld [vmem:[%s4111_s12 + $0x5c] ss:$20 sps:$4 sm:$0xff]  }
 0x2b3   : > { %2991 = vmatmul.mubr.bf16.gmra.mrb[12].mxu1 %v1192_v54  ;;  %v3233_v54 = vld [vmem:[%s4111_s12 + $0x78] ss:$20 sps:$4 sm:$0xff]  }
 0x2b4   : > { %1809 = vmatpush1.bf16.msra.mxu1 %v3197_v53  ;;  %v1180_v55 = vpop.f32.mrb[8].mxu0  ;;  %2994 = vmatprep.mubr.msk.bf16.mxu1 %vm3336_vm0, %v3335_v3  ;;  %v3235_v53 = vld [vmem:[%s4111_s12 + $0x7c] ss:$20 sps:$4 sm:$0xff]  }
 0x2b5   : > { %v1181_v57 = vadd.f32 %v2678_v35, %v1180_v55  ;;  %v2968_v58 = vpop.f32.mrb[9].mxu0  ;;  %1810 = vmatprep.subr.bf16.mxu1 %v3202_v27  ;;  %v3238_v27 = vld [vmem:[%s4111_s12 + $0x84] ss:$20 sps:$4 sm:$0xff]   ;;  %v3236_v55 = vld [vmem:[%s4111_s12 + $0x80] ss:$20 sps:$4 sm:$0xff]  }
 0x2b6   : > { %v1183_v60 = vpop.f32.mrb[10].mxu0  ;;  %v3244_v58 = vld [vmem:[%s4111_s12 + $0xac] ss:$20 sps:$4 sm:$0xff]  }
 0x2b7   : > { %1190 = vst [vmem:[%s3776_s22 + $0x18] sm:$0xff] %v1181_v57  ;;  %v1184_v61 = vadd.f32 %v2678_v35, %v1183_v60  ;;  %v2969_v62 = vpop.f32.mrb[11].mxu0  ;;  %v3247_v60 = vld [vmem:[%s4111_s12 + $0xcc] ss:$20 sps:$4 sm:$0xff]  }
 0x2b8   : > { %1811 = vmatpush1.bf16.msra.mxu1 %v3200_v56  ;;  %v3241_v56 = vld [vmem:[%s4111_s12 + $0xa4] ss:$20 sps:$4 sm:$0xff]   ;;  %v3250_v62 = vld [vmem:[%s4111_s12 + $0xd4] ss:$20 sps:$4 sm:$0xff]  }
 0x2b9   : > { %v1193_v1 = vpack.c.bf16 %v1184_v61, %v1181_v57  ;;  %1812 = vmatprep.subr.bf16.mxu1 %v3205_v59  ;;  %v3239_v57 = vld [vmem:[%s4111_s12 + $0xa0] ss:$20 sps:$4 sm:$0xff]   ;;  %v3242_v59 = vld [vmem:[%s4111_s12 + $0xa8] ss:$20 sps:$4 sm:$0xff]  }
 0x2ba   : > { %v3245_v61 = vld [vmem:[%s4111_s12 + $0xc8] ss:$20 sps:$4 sm:$0xff]  }
 0x2bb   : > { %2995 = vmatmul.mubr.bf16.gmra.mrb[16].mxu1 %v1193_v1  ;;  %v3253_v1 = vld [vmem:[%s4111_s12 + $0xf4] ss:$20 sps:$4 sm:$0xff]  }
 0x2bc   : > { %1813 = vmatpush1.bf16.msra.mxu1 %v3203_v0  ;;  %1836 = vmatprep.mubr.bf16.mxu1 %v3338_v15  ;;  %v3248_v0 = vld [vmem:[%s4111_s12 + $0xd0] ss:$20 sps:$4 sm:$0xff]  }
 0x2bd   : > { %1814 = vmatprep.subr.bf16.mxu1 %v3208_v2  ;;  %v3251_v2 = vld [vmem:[%s4111_s12 + $0xf0] ss:$20 sps:$4 sm:$0xff]  }
 0x2c0   : > { %1815 = vmatpush1.bf16.msra.mxu1 %v3206_v30  ;;  %v3256_v30 = vld [vmem:[%s4111_s12 + $0xfc] ss:$20 sps:$4 sm:$0xff]  }
 0x2c1   : > { %1816 = vmatprep.subr.bf16.mxu1 %v3211_v4  ;;  %v3254_v4 = vld [vmem:[%s4111_s12 + $0xf8] ss:$20 sps:$4 sm:$0xff]  }
 0x2c4   : > { %1817 = vmatpush1.bf16.msra.mxu1 %v3209_v5  ;;  %v3259_v5 = vld [vmem:[%s4111_s12 + $0x11c] ss:$20 sps:$4 sm:$0xff]  }
 0x2c5   : > { %1818 = vmatprep.subr.bf16.mxu1 %v3214_v6  ;;  %v3257_v6 = vld [vmem:[%s4111_s12 + $0x118] ss:$20 sps:$4 sm:$0xff]  }
 0x2c8   : > { %1819 = vmatpush1.bf16.msra.mxu1 %v3212_v32  ;;  %v3262_v32 = vld [vmem:[%s4111_s12 + $0x124] ss:$20 sps:$4 sm:$0xff]  }
 0x2c9   : > { %2189 = vmatprep.subr.bf16.mxu1 %v3220_v14 }
 0x2cb   : > { %2757 = vmatmul.mubr.msk.bf16.vlgmr.msra.gmra.mrb[20].mxu1 %vm3631_vm3, %v3636_v50  ;;  %v3215_v50 = vld [vmem:[%s4111_s12] ss:$20 sps:$4 sm:$0xff]  }
 0x2cc   : > { %1844 = vmatprep.mubr.bf16.mxu1 %v3338_v15  ;;  %2190 = vmatpush1.bf16.msra.mxu1 %v3218_v13 }
 0x2cd   : > { %2191 = vmatprep.subr.bf16.mxu1 %v3226_v44 }
 0x2d0   : > { %2192 = vmatpush1.bf16.msra.mxu1 %v3224_v45 }
 0x2d1   : > { %2193 = vmatprep.subr.bf16.mxu1 %v3232_v51 }
 0x2d3   : > { %1845 = vmatmul.mubr.bf16.gmra.mrb[24].mxu1 %v3659_v63  ;;  %v3217_v63 = vld [vmem:[%s4111_s12 + $0x4] ss:$20 sps:$4 sm:$0xff]  }
 0x2d4   : > { %v3837_v7 = vpop.f32.mrb[20].mxu0  ;;  %1854 = vmatprep.mubr.bf16.mxu1 %v3338_v15  ;;  %2128 = vmatprep.subr.bf16.mxu0 %v3217_v63 }
 0x2d5   : > { %v3840_v8 = vpop.f32.mrb[21].mxu0  ;;  %2129 = vmatpush1.bf16.msra.mxu0 %v3215_v50  ;;  %2194 = vmatpush1.bf16.msra.mxu1 %v3230_v52 }
 0x2d6   : > { %v1801_v9 = vpop.f32.mrb[22].mxu0  ;;  %2130 = vmatprep.subr.bf16.mxu0 %v3223_v41  ;;  %2195 = vmatprep.subr.bf16.mxu1 %v3238_v27 }
 0x2d7   : > { %v1802_v10 = vpop.f32.mrb[23].mxu0  ;;  %v3260_v9 = vld [vmem:[%s4111_s12 + $0x120] ss:$20 sps:$4 sm:$0xff]  }
 0x2d9   : > { %2131 = vmatpush1.bf16.msra.mxu0 %v3221_v22  ;;  %2196 = vmatpush1.bf16.msra.mxu1 %v3236_v55  ;;  %v3981_v55 = vld [vmem:[%s4109_s10] ss:$0 sm:$0xff] }
 0x2da   : > { %2132 = vmatprep.subr.bf16.mxu0 %v3229_v47  ;;  %2197 = vmatprep.subr.bf16.mxu1 %v3244_v58 }
 0x2db   : > { %2761 = vmatmul.mubr.msk.bf16.gmra.mrb[28].mxu1 %vm3677_vm5, %v3681_v12  ;;  %v2695_v12 = vld [vmem:[%s666_s17] ss:$0 sm:$0xff] }
 0x2dc   : > { %2221 = vmatprep.mubr.bf16.mxu1 %v3338_v15 }
 0x2dd   : > { %2133 = vmatpush1.bf16.msra.mxu0 %v3227_v26  ;;  %2198 = vmatpush1.bf16.msra.mxu1 %v3242_v59 }
 0x2de   : > { %2134 = vmatprep.subr.bf16.mxu0 %v3235_v53  ;;  %2199 = vmatprep.subr.bf16.mxu1 %v3250_v62 }
 0x2e1   : > { %2135 = vmatpush1.bf16.msra.mxu0 %v3233_v54  ;;  %2200 = vmatpush1.bf16.msra.mxu1 %v3248_v0 }
 0x2e2   : > { %2136 = vmatprep.subr.bf16.mxu0 %v3241_v56  ;;  %2201 = vmatprep.subr.bf16.mxu1 %v3256_v30  ;;  %v2705_v30 = vld [vmem:[%s4137_s1] ss:$0 sm:$0xff] }
 0x2e5   : > { %2137 = vmatpush1.bf16.msra.mxu0 %v3239_v57  ;;  %2202 = vmatpush1.bf16.msra.mxu1 %v3254_v4 }
 0x2e6   : > { %2138 = vmatprep.subr.bf16.mxu0 %v3247_v60  ;;  %2203 = vmatprep.subr.bf16.mxu1 %v3262_v32 }
 0x2e9   : > { %2139 = vmatpush1.bf16.msra.mxu0 %v3245_v61  ;;  %2204 = vmatpush1.bf16.msra.mxu1 %v3260_v9 }
 0x2ea   : > { %2140 = vmatprep.subr.bf16.mxu0 %v3253_v1 }
 0x2ed   : > { %2141 = vmatpush1.bf16.msra.mxu0 %v3251_v2 }
 0x2ee   : > { %2142 = vmatprep.subr.bf16.mxu0 %v3259_v5 }
 0x2f1   : > { %2143 = vmatpush1.bf16.msra.mxu0 %v3257_v6 }
 0x2f2   : > { %3026 = vmatprep.subr.bf16.mxu0 %v3335_v3 }
 0x37e   : > { %v1299_v16 = vpop.f32.mrb[8].mxu1 }
 0x37f   : > { %v3862_v17 = vadd.f32 %v2695_v12, %v1299_v16  ;;  %v2988_v18 = vpop.f32.mrb[9].mxu1 }
 0x380   : > { %v1302_v20 = vpop.f32.mrb[10].mxu1 }
 0x381   : > { %v3864_v21 = vadd.f32 %v2695_v12, %v1302_v20  ;;  %1324 = vadd.xlane.f32.xlu0 %v3862_v17  ;;  %v2989_v23 = vpop.f32.mrb[11].mxu1  ;;  %v1342_v24 = vmul.f32 %v3862_v17, %v3862_v17 }
 0x383   : > { %1326 = vadd.xlane.f32.xlu1 %v3864_v21  ;;  %v1343_v25 = vmul.f32 %v3864_v21, %v3864_v21 }
 0x385   : > { %1348 = vadd.xlane.f32.xlu0 %v1342_v24 }
 0x386   : > { %v1307_v28 = vpop.f32.mrb[12].mxu1 }
 0x387   : > { %v3872_v29 = vadd.f32 %v2695_v12, %v1307_v28  ;;  %1350 = vadd.xlane.f32.xlu1 %v1343_v25  ;;  %v2992_v19 = vpop.f32.mrb[13].mxu1 }
 0x388   : > { %v1310_v31 = vpop.f32.mrb[14].mxu1 }
 0x389   : > { %v3874_v33 = vadd.f32 %v2695_v12, %v1310_v31  ;;  %1328 = vadd.xlane.f32.xlu0 %v3872_v29  ;;  %v2993_v34 = vpop.f32.mrb[15].mxu1  ;;  %v1344_v35 = vmul.f32 %v3872_v29, %v3872_v29 }
 0x38b   : > { %1330 = vadd.xlane.f32.xlu1 %v3874_v33  ;;  %v1345_v36 = vmul.f32 %v3874_v33, %v3874_v33 }
 0x38d   : > { %1352 = vadd.xlane.f32.xlu0 %v1344_v35 }
 0x38e   : > { %v1315_v37 = vpop.f32.mrb[16].mxu1 }
 0x38f   : > { %v3882_v38 = vadd.f32 %v2695_v12, %v1315_v37  ;;  %1354 = vadd.xlane.f32.xlu1 %v1345_v36  ;;  %v2996_v39 = vpop.f32.mrb[17].mxu1 }
 0x390   : > { %v1318_v40 = vpop.f32.mrb[18].mxu1 }
 0x391   : > { %v3887_v42 = vadd.f32 %v2695_v12, %v1318_v40  ;;  %1332 = vadd.xlane.f32.xlu0 %v3882_v38  ;;  %v2997_v43 = vpop.f32.mrb[19].mxu1  ;;  %v1346_v46 = vmul.f32 %v3882_v38, %v3882_v38 }
 0x393   : > { %1334 = vadd.xlane.f32.xlu1 %v3887_v42  ;;  %v1347_v49 = vmul.f32 %v3887_v42, %v3887_v42 }
 0x395   : > { %1356 = vadd.xlane.f32.xlu0 %v1346_v46 }
 0x397   : > { %1358 = vadd.xlane.f32.xlu1 %v1347_v49 }
 0x40e   : > { %v1325_v10 = vpop.xlane.xlu0 %1324 }
 0x40f   : > { %v1336_v50 = vmul.f32 0.0125, %v1325_v10 }
 0x410   : > { %v1327_v63 = vpop.xlane.xlu1 %1326 }
 0x411   : > { %v1337_v13 = vmul.f32 0.0125, %v1327_v63  ;;  %v1366_v12 = vmul.f32 %v1336_v50, %v1336_v50  ;;  %v1378_v52 = vsub.f32 %v3862_v17, %v1336_v50  ;;  %v3263_v63 = vld [vmem:[%s4111_s12 + $0x10] ss:$20 sps:$4 sm:$0xff]  }
 0x412   : > { %v1349_v14 = vpop.xlane.xlu0 %1348 }
 0x413   : > { %v1360_v16 = vmul.f32 0.0125, %v1349_v14  ;;  %v1367_v20 = vmul.f32 %v1337_v13, %v1337_v13  ;;  %v1379_v58 = vsub.f32 %v3864_v21, %v1337_v13 }
 0x414   : > { %v1351_v18 = vpop.xlane.xlu1 %1350 }
 0x415   : > { %v1372_v23 = vsub.f32 %v1360_v16, %v1366_v12  ;;  %v1361_v24 = vmul.f32 0.0125, %v1351_v18 }
 0x416   : > { %v1329_v25 = vpop.xlane.xlu0 %1328 }
 0x417   : > { %v1384_v28 = vadd.f32 1e-05, %v1372_v23  ;;  %v1373_v19 = vsub.f32 %v1361_v24, %v1367_v20  ;;  %v1338_v31 = vmul.f32 0.0125, %v1329_v25  ;;  %v3264_v20 = vld [vmem:[%s4111_s12 + $0x38] ss:$20 sps:$4 sm:$0xff]  }
 0x418   : > { %v1331_v34 = vpop.xlane.xlu1 %1330 }
 0x419   : > { %3283 = vrsqrt.f32 %v1384_v28  ;;  %v1385_v35 = vadd.f32 1e-05, %v1373_v19  ;;  %v1339_v36 = vmul.f32 0.0125, %v1331_v34  ;;  %v1368_v39 = vmul.f32 %v1338_v31, %v1338_v31  ;;  %v3265_v19 = vld [vmem:[%s4111_s12 + $0x60] ss:$20 sps:$4 sm:$0xff]  }
 0x41a   : > { %v1353_v37 = vpop.xlane.xlu0 %1352  ;;  %v1380_v10 = vsub.f32 %v3872_v29, %v1338_v31 }
 0x41b   : > { %3285 = vrsqrt.f32 %v1385_v35  ;;  %v1362_v40 = vmul.f32 0.0125, %v1353_v37  ;;  %v1369_v43 = vmul.f32 %v1339_v36, %v1339_v36  ;;  %v1381_v13 = vsub.f32 %v3874_v33, %v1339_v36 }
 0x41c   : > { %v1355_v41 = vpop.xlane.xlu1 %1354 }
 0x41d   : > { %v1374_v22 = vsub.f32 %v1362_v40, %v1368_v39  ;;  %v1363_v44 = vmul.f32 0.0125, %v1355_v41  ;;  %v3266_v39 = vld [vmem:[%s4111_s12 + $0x88] ss:$20 sps:$4 sm:$0xff]  }
 0x41e   : > { %v1333_v45 = vpop.xlane.xlu0 %1332 }
 0x41f   : > { %v1386_v46 = vadd.f32 1e-05, %v1374_v22  ;;  %v1375_v47 = vsub.f32 %v1363_v44, %v1369_v43  ;;  %v1340_v49 = vmul.f32 0.0125, %v1333_v45  ;;  %v3267_v43 = vld [vmem:[%s4111_s12 + $0xb0] ss:$20 sps:$4 sm:$0xff]  }
 0x420   : > { %v1335_v26 = vpop.xlane.xlu1 %1334  ;;  %v3269_v44 = vld [vmem:[%s4111_s12 + $0x100] ss:$20 sps:$4 sm:$0xff]   ;;  %v3270_v45 = vld [vmem:[%s4111_s12 + $0x128] ss:$20 sps:$4 sm:$0xff]  }
 0x421   : > { %3287 = vrsqrt.f32 %v1386_v46  ;;  %v1387_v51 = vadd.f32 1e-05, %v1375_v47  ;;  %v1341_v53 = vmul.f32 0.0125, %v1335_v26  ;;  %v1370_v56 = vmul.f32 %v1340_v49, %v1340_v49 }
 0x422   : > { %v1357_v54 = vpop.xlane.xlu0 %1356  ;;  %v1382_v24 = vsub.f32 %v3882_v38, %v1340_v49 }
 0x423   : > { %v3284_v27 = vpop.eup %3283  ;;  %3289 = vrsqrt.f32 %v1387_v51  ;;  %v1364_v57 = vmul.f32 0.0125, %v1357_v54  ;;  %v1371_v62 = vmul.f32 %v1341_v53, %v1341_v53  ;;  %v1383_v31 = vsub.f32 %v3887_v42, %v1341_v53  ;;  %v2834_v51 = vld [vmem:[%s4139_s29] ss:$0 sm:$0xff] }
 0x424   : > { %v1396_v59 = vmul.f32 %v3284_v27, %v1378_v52  ;;  %v1359_v60 = vpop.xlane.xlu1 %1358 }
 0x425   : > { %v3286_v61 = vpop.eup %3285  ;;  %v1376_v0 = vsub.f32 %v1364_v57, %v1370_v56  ;;  %v1365_v17 = vmul.f32 0.0125, %v1359_v60 }
 0x426   : > { %v1408_v1 = vmul.f32 %v3981_v55, %v1396_v59  ;;  %v1397_v2 = vmul.f32 %v3286_v61, %v1379_v58 }
 0x427   : > { %v1388_v4 = vadd.f32 1e-05, %v1376_v0  ;;  %v1377_v5 = vsub.f32 %v1365_v17, %v1371_v62 }
 0x428   : > { %v1409_v6 = vmul.f32 %v3981_v55, %v1397_v2  ;;  %v1420_v32 = vadd.f32 %v2705_v30, %v1408_v1 }
 0x429   : > { %3291 = vrsqrt.f32 %v1388_v4  ;;  %v1389_v21 = vadd.f32 1e-05, %v1377_v5 }
 0x42a   : > { %v1421_v9 = vadd.f32 %v2705_v30, %v1409_v6 }
 0x42b   : > { %v3288_v50 = vpop.eup %3287  ;;  %3293 = vrsqrt.f32 %v1389_v21 }
 0x42c   : > { %1426 = vst [vmem:[%s3993_s30] sm:$0xff] %v1421_v9  ;;  %v2812_v14 = vpack.c.bf16 %v1421_v9, %v1420_v32  ;;  %v1398_v12 = vmul.f32 %v3288_v50, %v1380_v10 }
 0x42d   : > { %v3290_v16 = vpop.eup %3289 }
 0x42e   : > { %2813 = vmatmul.mubr.msk.bf16.vlgmr.msra.gmra.mrb[12].mxu0 %vm3631_vm3, %v2812_v14  ;;  %2821 = vmatmul.mubr.msk.bf16.vlgmr.msra.gmra.mrb[20].mxu1 %vm3631_vm3, %v2812_v14  ;;  %v1399_v29 = vmul.f32 %v3290_v16, %v1381_v13  ;;  %v1410_v18 = vmul.f32 %v3981_v55, %v1398_v12 }
 0x42f   : > { %3027 = vmatpush3.bf16.msra.mxu0 %v3263_v63  ;;  %2170 = vmatprep.mubr.bf16.mxu0 %v3338_v15 }
 0x430   : > { %3028 = vmatprep.subr.bf16.mxu0 %v3335_v3  ;;  %2229 = vmatprep.mubr.bf16.mxu1 %v3338_v15  ;;  %v1411_v33 = vmul.f32 %v3981_v55, %v1399_v29  ;;  %v1422_v23 = vadd.f32 %v2705_v30, %v1410_v18 }
 0x432   : > { %v1423_v25 = vadd.f32 %v2705_v30, %v1411_v33  ;;  %1427 = vst [vmem:[%s3993_s30 + $0x8] sm:$0xff] %v1422_v23 }
 0x433   : > { %v3292_v28 = vpop.eup %3291  ;;  %3029 = vmatpush3.bf16.msra.mxu0 %v3264_v20 }
 0x434   : > { %3030 = vmatprep.subr.bf16.mxu0 %v3335_v3  ;;  %1428 = vst [vmem:[%s3993_s30 + $0x10] sm:$0xff] %v1423_v25  ;;  %v1437_v34 = vpack.c.bf16 %v1423_v25, %v1422_v23  ;;  %v1400_v35 = vmul.f32 %v3292_v28, %v1382_v24 }
 0x435   : > { %v3294_v36 = vpop.eup %3293 }
 0x436   : > { %2171 = vmatmul.mubr.bf16.gmra.mrb[16].mxu0 %v1437_v34  ;;  %2230 = vmatmul.mubr.bf16.gmra.mrb[24].mxu1 %v1437_v34  ;;  %v1401_v38 = vmul.f32 %v3294_v36, %v1383_v31  ;;  %v1412_v37 = vmul.f32 %v3981_v55, %v1400_v35 }
 0x437   : > { %3031 = vmatpush3.bf16.msra.mxu0 %v3265_v19  ;;  %2180 = vmatprep.mubr.bf16.mxu0 %v3338_v15 }
 0x438   : > { %3032 = vmatprep.subr.bf16.mxu0 %v3335_v3  ;;  %2239 = vmatprep.mubr.bf16.mxu1 %v3338_v15  ;;  %v1413_v42 = vmul.f32 %v3981_v55, %v1401_v38  ;;  %v1424_v40 = vadd.f32 %v2705_v30, %v1412_v37  ;;  %v3268_v15 = vld [vmem:[%s4111_s12 + $0xd8] ss:$20 sps:$4 sm:$0xff]  }
 0x43a   : > { %v1425_v41 = vadd.f32 %v2705_v30, %v1413_v42  ;;  %1429 = vst [vmem:[%s3993_s30 + $0x18] sm:$0xff] %v1424_v40 }
 0x43b   : > { %3033 = vmatpush3.bf16.msra.mxu0 %v3266_v39 }
 0x43c   : > { %3034 = vmatprep.subr.bf16.mxu0 %v3335_v3  ;;  %v2816_v22 = vpack.c.bf16 %v1425_v41, %v1424_v40 }
 0x43e   : > { %2817 = vmatmul.mubr.msk.bf16.gmra.mrb[36].mxu0 %vm3677_vm5, %v2816_v22  ;;  %2825 = vmatmul.mubr.msk.bf16.gmra.mrb[28].mxu1 %vm3677_vm5, %v2816_v22 }
 0x43f   : > { %3035 = vmatpush3.bf16.msra.mxu0 %v3267_v43  ;;  %3042 = vmatprep.mubr.msk.bf16.mxu0 %vm3336_vm0, %v3335_v3 }
 0x440   : > { %3036 = vmatprep.subr.bf16.mxu0 %v3335_v3 }
 0x443   : > { %3037 = vmatpush3.bf16.msra.mxu0 %v3268_v15 }
 0x444   : > { %3038 = vmatprep.subr.bf16.mxu0 %v3335_v3 }
 0x447   : > { %3039 = vmatpush3.bf16.msra.mxu0 %v3269_v44 }
 0x448   : > { %3040 = vmatprep.subr.bf16.mxu0 %v3335_v3 }
 0x44b   : > { %3041 = vmatpush3.bf16.msra.mxu0 %v3270_v45 }
 0x44e   : > { %3043 = vmatmul.mubr.msk.bf16.vlgmr.msra.gmra.mrb[24].mxu0 %vm3631_vm3, %v2812_v14 }
 0x44f   : > { %3046 = vmatprep.mubr.msk.bf16.mxu0 %vm3336_vm0, %v3335_v3 }
 0x456   : > { %3047 = vmatmul.mubr.bf16.gmra.mrb[28].mxu0 %v1437_v34 }
 0x457   : > { %3050 = vmatprep.mubr.msk.bf16.mxu0 %vm3336_vm0, %v3335_v3 }
 0x45e   : > { %3051 = vmatmul.mubr.msk.bf16.gmra.mrb[32].mxu0 %vm3677_vm5, %v2816_v22 }
 0x501   : > { %v2162_v46 = vpop.f32.mrb[12].mxu0  ;;  %v2223_v47 = vpop.f32.mrb[20].mxu1 }
 0x502   : > { %v2164_v49 = vpop.f32.mrb[13].mxu0  ;;  %v2224_v26 = vpop.f32.mrb[21].mxu1  ;;  %v2313_v56 = vadd.f32 %v2834_v51, %v2162_v46 }
 0x503   : > { %v2166_v48 = vpop.f32.mrb[14].mxu0  ;;  %v2225_v52 = vpop.f32.mrb[22].mxu1  ;;  %v2324_v27 = vrot.slane %v2164_v49, 1 }
 0x504   : > { %v2168_v53 = vpop.f32.mrb[15].mxu0  ;;  %v2227_v54 = vpop.f32.mrb[23].mxu1  ;;  %v2348_v11 = vrot.slane %v2225_v52, 2  ;;  %v2314_v5 = vadd.f32 %v2834_v51, %v2166_v48 }
 0x505   : > { %v2325_v55 = vrot.slane %v2168_v53, 1  ;;  %v2371_v61 = vrot.slane %v2227_v54, 3 }
 0x507   : > { %v2326_v3 = vsel %vm2323_vm6, %v2324_v27, %v2325_v55 }
 0x508   : > { %v2338_v57 = vadd.f32 %v2326_v3, %v2313_v56 }
 0x509   : > { %v2172_v58 = vpop.f32.mrb[16].mxu0  ;;  %v2231_v59 = vpop.f32.mrb[24].mxu1 }
 0x50a   : > { %v2360_v60 = vadd.f32 %v2348_v11, %v2338_v57  ;;  %v2349_v62 = vrot.slane %v2231_v59, 2  ;;  %v2174_v0 = vpop.f32.mrb[17].mxu0  ;;  %v2233_v17 = vpop.f32.mrb[25].mxu1  ;;  %v2315_v12 = vadd.f32 %v2834_v51, %v2172_v58 }
 0x50b   : > { %v2327_v1 = vrot.slane %v2174_v0, 1  ;;  %v2372_v2 = vrot.slane %v2233_v17, 3  ;;  %v2176_v30 = vpop.f32.mrb[18].mxu0  ;;  %v2235_v4 = vpop.f32.mrb[26].mxu1 }
 0x50c   : > { %v2385_v6 = vadd.f32 %v2371_v61, %v2360_v60  ;;  %v2350_v21 = vsel %vm2347_vm7, %v2348_v11, %v2349_v62  ;;  %v2351_v32 = vrot.slane %v2235_v4, 2  ;;  %v2178_v9 = vpop.f32.mrb[19].mxu0  ;;  %v2237_v10 = vpop.f32.mrb[27].mxu1 }
 0x50d   : > { %v2328_v50 = vsel %vm2323_vm6, %v2325_v55, %v2327_v1  ;;  %v2373_v63 = vsel %vm2370_vm8, %v2371_v61, %v2372_v2  ;;  %v2329_v13 = vrot.slane %v2178_v9, 1  ;;  %v2374_v14 = vrot.slane %v2237_v10, 3 }
 0x50e   : > { %v2339_v16 = vadd.f32 %v2328_v50, %v2314_v5  ;;  %v2352_v29 = vsel %vm2347_vm7, %v2349_v62, %v2351_v32 }
 0x50f   : > { %v2330_v18 = vsel %vm2323_vm6, %v2327_v1, %v2329_v13  ;;  %v2375_v20 = vsel %vm2370_vm8, %v2372_v2, %v2374_v14 }
 0x510   : > { %v2361_v33 = vadd.f32 %v2350_v21, %v2339_v16  ;;  %v2340_v23 = vadd.f32 %v2330_v18, %v2315_v12 }
 0x511   : > { %v2182_v24 = vpop.f32.mrb[36].mxu0  ;;  %v2241_v25 = vpop.f32.mrb[28].mxu1 }
 0x512   : > { %v2386_v28 = vadd.f32 %v2373_v63, %v2361_v33  ;;  %v2362_v19 = vadd.f32 %v2352_v29, %v2340_v23  ;;  %v2183_v31 = vadd.f32 %v2182_v24, %v3837_v7  ;;  %v2353_v34 = vrot.slane %v2241_v25, 2  ;;  %v2184_v35 = vpop.f32.mrb[37].mxu0  ;;  %v2243_v36 = vpop.f32.mrb[29].mxu1 }
 0x513   : > { %v2185_v38 = vadd.f32 %v2184_v35, %v3840_v8  ;;  %v2376_v37 = vrot.slane %v2243_v36, 3  ;;  %v2186_v39 = vpop.f32.mrb[38].mxu0  ;;  %v2245_v42 = vpop.f32.mrb[30].mxu1  ;;  %v2316_v7 = vadd.f32 %v2834_v51, %v2176_v30 }
 0x514   : > { %v2387_v40 = vadd.f32 %v2375_v20, %v2362_v19  ;;  %v2317_v41 = vadd.f32 %v2834_v51, %v2183_v31  ;;  %v2354_v43 = vsel %vm2347_vm7, %v2351_v32, %v2353_v34  ;;  %v2187_v22 = vpop.f32.mrb[39].mxu0  ;;  %v2246_v15 = vpop.f32.mrb[31].mxu1 }
 0x515   : > { %v2331_v44 = vrot.slane %v2185_v38, 1  ;;  %v2377_v45 = vsel %vm2370_vm8, %v2374_v14, %v2376_v37  ;;  %v2378_v46 = vrot.slane %v2246_v15, 3 }
 0x517   : > { %v2332_v47 = vsel %vm2323_vm6, %v2329_v13, %v2331_v44  ;;  %v2342_v49 = vadd.f32 %v2331_v44, %v2317_v41  ;;  %v2379_v8 = vsel %vm2370_vm8, %v2376_v37, %v2378_v46 }
 0x518   : > { %v2341_v26 = vadd.f32 %v2332_v47, %v2316_v7 }
 0x519   : > { %v2364_v48 = vadd.f32 %v2353_v34, %v2342_v49 }
 0x51a   : > { %v2363_v52 = vadd.f32 %v2354_v43, %v2341_v26 }
 0x51b   : > { %v2389_v53 = vadd.f32 %v2379_v8, %v2364_v48 }
 0x51c   : > { %v2388_v54 = vadd.f32 %v2377_v45, %v2363_v52 }
 0x521   : > { %v2283_v27 = vpop.f32.mrb[24].mxu0 }
 0x522   : > { %v3044_v55 = vpop.f32.mrb[25].mxu0 }
 0x523   : > { %v2285_v56 = vpop.f32.mrb[26].mxu0 }
 0x524   : > { %v2396_v3 = vrot.slane %v2285_v56, 4  ;;  %v3045_v11 = vpop.f32.mrb[27].mxu0 }
 0x526   : > { %v2410_v51 = vadd.f32 %v2396_v3, %v2385_v6 }
 0x528   : > { %2415 = vst [vmem:[%s695_s16 - $0x6] sm:$0xc0] %v2410_v51 }
 0x529   : > { %v2290_v57 = vpop.f32.mrb[28].mxu0 }
 0x52a   : > { %v2397_v58 = vrot.slane %v2290_v57, 4  ;;  %v3048_v59 = vpop.f32.mrb[29].mxu0 }
 0x52b   : > { %v2293_v60 = vpop.f32.mrb[30].mxu0 }
 0x52c   : > { %v2398_v61 = vsel %vm2395_vm9, %v2396_v3, %v2397_v58  ;;  %v2399_v62 = vrot.slane %v2293_v60, 4  ;;  %v3049_v0 = vpop.f32.mrb[31].mxu0 }
 0x52d   : > { %v2411_v17 = vadd.f32 %v2398_v61, %v2386_v28 }
 0x52e   : > { %v2400_v1 = vsel %vm2395_vm9, %v2397_v58, %v2399_v62 }
 0x52f   : > { %2416 = vst [vmem:[%s695_s16 + $0x2] sm:$0xff] %v2411_v17  ;;  %v2412_v2 = vadd.f32 %v2400_v1, %v2387_v40 }
 0x531   : > { %2417 = vst [vmem:[%s695_s16 + $0xa] sm:$0xff] %v2412_v2  ;;  %v2298_v30 = vpop.f32.mrb[32].mxu0 }
 0x532   : > { %v2401_v4 = vrot.slane %v2298_v30, 4  ;;  %v3052_v5 = vpop.f32.mrb[33].mxu0 }
 0x533   : > { %v2301_v6 = vpop.f32.mrb[34].mxu0 }
 0x534   : > { %v2402_v21 = vsel %vm2395_vm9, %v2399_v62, %v2401_v4  ;;  %v2403_v32 = vrot.slane %v2301_v6, 4  ;;  %v3053_v9 = vpop.f32.mrb[35].mxu0 }
 0x535   : > { %v2413_v10 = vadd.f32 %v2402_v21, %v2388_v54 }
 0x536   : > { %v2404_v50 = vsel %vm2395_vm9, %v2401_v4, %v2403_v32 }
 0x537   : > { %2418 = vst [vmem:[%s695_s16 + $0x12] sm:$0xff] %v2413_v10  ;;  %v2414_v63 = vadd.f32 %v2404_v50, %v2389_v53 }
 0x539   : > { %2419 = vst [vmem:[%s695_s16 + $0x1a] sm:$0x3f] %v2414_v63 }
 0x53a PF: > { %s4141_s18 = sld [smem:[#allocation4_spill]]  ;;  %s4142_s24 = sld [smem:[#allocation2_spill]] }
 0x53b   : > { %s4143_s25 = sld [smem:[#allocation3_spill]]  ;;  %s4144_s26 = sld [smem:[#allocation5_spill]] }
 0x53c   : > { %s4145_s27 = sld [smem:[#allocation6_spill]] }
 0x540   : > { %s28_s28 = sadd.s32 1, %s4141_s18  }
 0x541   : > { %p25_p10 = scmp.ge.s32.totalorder %s28_s28, 8  }
 0x543   :  { %27 = sbr.rel (!%p25_p10) target bundleno = 7 (0x7), region = 143 }

</bundles_post_ra>
